<compile_context>
chip_gen: v7x
topology: tpu7x:2x2x1
jax: 0.10.0
libtpu: 0.0.40
codegen_flags: <defaults>
</compile_context>

<pallas_src>
import functools

import jax
import jax.numpy as jnp
from jax.experimental import pallas as pl
from jax.experimental.pallas import tpu as pltpu


def _round_up(x, m):
    return ((x + m - 1) // m) * m


def _tpu_vmem_bytes():
    try:
        return int(pltpu.get_tpu_info().vmem_capacity_bytes)
    except Exception:
        return 64 << 20          # conservative fallback (safe on every generation)


def _apply_act(x, act):
    if act is None or act == "none":
        return x
    if act == "relu":
        return jnp.maximum(x, 0.0)
    if act in ("silu", "swish"):
        return x * pl.reciprocal(1.0 + jnp.exp(-x), approx=True)
    if act == "sigmoid":
        return pl.reciprocal(1.0 + jnp.exp(-x), approx=True)
    if act == "tanh":
        return jnp.tanh(x)
    raise ValueError(f"unsupported activation: {act!r}")


def _conv_kernel(x_hbm, w_ref, b_ref, *refs, stride, kh_size, kw_size, th, wo,
                 act, fuse_act, emit_stats, slice_w_cols, ct, per_tap,
                 prefetch_j):
    """One (batch, row-tile, cout-tile) grid step.

    x_hbm : padded NHWC input, left in HBM (manual halo DMA, double-buffered).
    w_ref : folded weight; full (KH*KW*Cin_pad, Cout_pad) when resident, else (.., ct).
    b_ref : (1, ct) bias tile (f32).
    out_ref: (th*wo, ct) flat output tile.
    sum_ref/ssq_ref (only when emit_stats): (1, 1, ct) per-tile channel stats.
    slab_ref: (2, hc, Wp, Cin_pad) double-buffered VMEM scratch for the input halo.
    """
    if emit_stats:
        out_ref, sum_ref, ssq_ref, slab_ref, sem = refs
    else:
        out_ref, slab_ref, sem = refs
        sum_ref = ssq_ref = None

    b = pl.program_id(0)          # batch index
    j = pl.program_id(1)          # output-row tile within one image
    c = pl.program_id(2)          # output-channel tile (innermost, arbitrary)
    n_ho = pl.num_programs(1)

    hc = (th - 1) * stride + kh_size      # padded input rows one slab holds
    cin_pad = slab_ref.shape[-1]
    rows = th * wo
    slot = j % 2

    def _start(ji, sl):
        h0 = pl.multiple_of(ji * (th * stride), th * stride)
        pltpu.make_async_copy(x_hbm.at[b, pl.ds(h0, hc)],
                              slab_ref.at[sl], sem.at[sl]).start()

    @pl.when(c == 0)
    def _fetch():
        if prefetch_j:
            # First row tile of this image: nothing has prefetched its slab yet.
            @pl.when(j == 0)
            def _():
                _start(0, 0)

            # Prefetch the next row tile's slab so its HBM DMA overlaps this
            # tile's compute (double buffering across j within one image).
            @pl.when(j + 1 < n_ho)
            def _():
                _start(j + 1, (j + 1) % 2)
        else:
            # Megacore-over-row-tiles mode: j is not sequential per core, so no
            # cross-row-tile prefetch (blocking fetch is the safe schedule).
            _start(j, slot)
        pltpu.make_async_copy(x_hbm.at[0, pl.ds(0, hc)],
                              slab_ref.at[slot], sem.at[slot]).wait()

    cur = slab_ref.at[slot]

    if slice_w_cols:
        col0 = pl.multiple_of(c * ct, 128)

    def w_block(r0, nr):
        if slice_w_cols:
            return w_ref[pl.ds(r0, nr), pl.ds(col0, ct)]
        return w_ref[r0:r0 + nr, :]

    def tap(kh_i, kw_i):
        if stride == 1:
            t = cur[kh_i:kh_i + th, kw_i:kw_i + wo, :]
        else:
            # TODO(synk): for stride > 1, decimate the width once in the DMA
            # (or into a compact scratch) instead of per-tap strided loads.
            t = cur[pl.ds(kh_i, th, stride), pl.ds(kw_i, wo, stride), :]
        return t.reshape(rows, cin_pad)

    if per_tap:
        # Deep-Cin path: accumulate KH*KW partial matmuls (depth = cin_pad >= 128)
        # instead of materializing a large concat-im2col patch.
        acc = None
        for idx in range(kh_size * kw_size):
            kh_i, kw_i = divmod(idx, kw_size)
            part = jnp.dot(tap(kh_i, kw_i), w_block(idx * cin_pad, cin_pad),
                           preferred_element_type=jnp.float32)
            acc = part if acc is None else acc + part
    else:
        # Small-Cin path: fold all taps into one deep MXU contraction.
        patch = jnp.concatenate(
            [tap(kh_i, kw_i)
             for kh_i in range(kh_size) for kw_i in range(kw_size)], axis=-1)
        acc = jnp.dot(patch, w_block(0, kh_size * kw_size * cin_pad),
                      preferred_element_type=jnp.float32)

    acc = acc + b_ref[...]                            # (1, ct) broadcast, f32

    if emit_stats:
        # Per-tile channel statistics (f32, from the f32 accumulator) for fused BN.
        cw = acc.shape[1]
        sum_ref[...] = jnp.sum(acc, axis=0, keepdims=True).reshape(1, 1, cw)
        ssq_ref[...] = jnp.sum(acc * acc, axis=0, keepdims=True).reshape(1, 1, cw)

    if fuse_act:
        acc = _apply_act(acc, act)
    out_ref[...] = acc.astype(out_ref.dtype)


def _scale_shift_act_kernel(x_ref, scale_ref, shift_ref, o_ref, *, act):
    """Fused BatchNorm apply (y = x*scale + shift) + activation."""
    y = x_ref[...].astype(jnp.float32) * scale_ref[...] + shift_ref[...]
    o_ref[...] = _apply_act(y, act).astype(o_ref.dtype)


def _choose_tiling(*, ho, wo, kh, stride, wp, cin_pad, kdeep, ct, cout_pad,
                   in_itemsize, out_itemsize, per_tap, vmem_cap, sub):
    """Pick the output-row tile (th) and whether the folded weight is VMEM-resident."""
    rows_cap = 512 if vmem_cap <= (64 << 20) else 1024   # v7x vs v5e/v6e
    budget = int(vmem_cap * 0.6)                          # headroom for Mosaic scratch

    divs = [d for d in range(1, ho + 1) if ho % d == 0 and (d * wo) % sub == 0]
    if not divs:
        raise ValueError(
            f"cannot tile ho={ho}, wo={wo}: need a divisor th of ho with "
            f"(th*wo) % {sub} == 0")
    cands = sorted([d for d in divs if d * wo <= rows_cap], reverse=True)
    if not cands:
        cands = [min(divs)]

    def footprint(th, weight_bytes):
        hc = (th - 1) * stride + kh
        rows = th * wo
        slab = 2 * hc * wp * cin_pad * in_itemsize        # double-buffered halo
        outb = 2 * rows * ct * out_itemsize               # double-buffered output
        patch = 0 if per_tap else rows * kdeep * in_itemsize
        acc = rows * ct * 4
        return slab + outb + patch + acc + weight_bytes + (8 * ct * 4)

    w_res_bytes = 2 * kdeep * cout_pad * in_itemsize      # full weight (x2 buffers)
    w_tile_bytes = 2 * kdeep * ct * in_itemsize
    for th in cands:
        if footprint(th, w_res_bytes) <= budget:
            return th, True
    for th in cands:
        if footprint(th, w_tile_bytes) <= budget:
            return th, False
    return cands[-1], False


def base_conv(x_nchw, weight_oihw, bias, *, stride=1, activation="relu",
              use_bn=False, bn_gamma=None, bn_beta=None, bn_eps=1e-5):
    """Forward pass of BaseConv.  x_nchw: [N, Cin, H, W] (PyTorch layout)."""
    cout, cin, kh, kw = weight_oihw.shape
    assert kh == kw, "square kernels only (as in BaseConv)"
    pad = kh // 2                                 # nn.Conv2d(..., padding=kernel // 2)

    n, _, h, w = x_nchw.shape
    ho = (h + 2 * pad - kh) // stride + 1
    wo = (w + 2 * pad - kw) // stride + 1

    in_dtype = x_nchw.dtype
    in_itemsize = jnp.dtype(in_dtype).itemsize
    out_dtype = in_dtype                          # also on the BN path (keeps pass 2 cheap)
    out_itemsize = jnp.dtype(out_dtype).itemsize

    cin_pad = _round_up(cin, 128)                 # lane-dense contraction / slab
    cout_pad = _round_up(cout, 128)               # lane-dense output channels
    ct = 256 if cout_pad % 256 == 0 else 128
    n_ct = cout_pad // ct
    kdeep = kh * kw * cin_pad
    per_tap = cin >= 128                          # deep layers: skip concat-im2col temps

    # ---- host-side layout prep (NCHW -> NHWC, zero pad halo + channels) ------
    # TODO(synk): fold the NCHW<->NHWC transposes and the zero-pad halo into the
    # kernel's DMA (memset the halo in VMEM) and keep activations NHWC across
    # layers so these extra HBM passes disappear.
    x_nhwc = jnp.transpose(x_nchw, (0, 2, 3, 1))
    x_pad = jnp.pad(x_nhwc, ((0, 0), (pad, pad), (pad, pad), (0, cin_pad - cin)))
    hp, wp = h + 2 * pad, w + 2 * pad

    w_hwio = jnp.transpose(weight_oihw, (2, 3, 1, 0))            # (KH,KW,Cin,Cout)
    w_hwio = jnp.pad(w_hwio, ((0, 0), (0, 0),
                              (0, cin_pad - cin), (0, cout_pad - cout)))
    w2d = w_hwio.reshape(kdeep, cout_pad).astype(in_dtype)
    b2d = jnp.pad(bias.astype(jnp.float32), (0, cout_pad - cout)).reshape(1, cout_pad)

    vmem_cap = _tpu_vmem_bytes()
    sub = 16 if out_itemsize == 2 else 8
    th, weight_resident = _choose_tiling(
        ho=ho, wo=wo, kh=kh, stride=stride, wp=wp, cin_pad=cin_pad, kdeep=kdeep,
        ct=ct, cout_pad=cout_pad, in_itemsize=in_itemsize,
        out_itemsize=out_itemsize, per_tap=per_tap, vmem_cap=vmem_cap, sub=sub)
    n_ho = ho // th
    rows = th * wo
    hc = (th - 1) * stride + kh
    m_total = n * ho * wo
    slice_w_cols = weight_resident and n_ct > 1
    vmem_limit = int(vmem_cap * 3 // 4)

    # v7x megacore fallback: with batch==1 shard row tiles across the two cores
    # (cross-row-tile prefetch is disabled in that mode to keep the DMA schedule valid).
    two_core_hint = vmem_cap <= (64 << 20)
    if n == 1 and two_core_hint and n_ho >= 2:
        dim_sem = ("arbitrary", "parallel", "arbitrary")
        prefetch_j = False
    else:
        dim_sem = ("parallel", "arbitrary", "arbitrary")
        prefetch_j = True

    kernel = functools.partial(
        _conv_kernel, stride=stride, kh_size=kh, kw_size=kw, th=th, wo=wo,
        act=activation, fuse_act=not use_bn, emit_stats=use_bn,
        slice_w_cols=slice_w_cols, ct=ct, per_tap=per_tap, prefetch_j=prefetch_j)

    if slice_w_cols:
        # Full weight resident in VMEM (DMA'd once; constant block index).
        w_spec = pl.BlockSpec((kdeep, cout_pad), lambda b, j, c: (0, 0))
    else:
        # Either n_ct == 1 (constant index -> resident anyway) or weight too big.
        # TODO(synk): when the full weight does not fit VMEM, reorder / carry the
        # weight tile so it is not re-streamed once per (batch, row-tile).
        w_spec = pl.BlockSpec((kdeep, ct), lambda b, j, c: (0, c))

    in_specs = [
        pl.BlockSpec(memory_space=pl.ANY),                        # padded input (HBM)
        w_spec,
        pl.BlockSpec((1, ct), lambda b, j, c: (0, c)),
    ]
    out_specs = [pl.BlockSpec((rows, ct), lambda b, j, c: (b * n_ho + j, c))]
    out_shapes = [jax.ShapeDtypeStruct((m_total, cout_pad), out_dtype)]
    if use_bn:
        out_specs += [pl.BlockSpec((1, 1, ct),
                                   lambda b, j, c: (b * n_ho + j, 0, c))] * 2
        out_shapes += [jax.ShapeDtypeStruct((n * n_ho, 1, cout_pad), jnp.float32)] * 2

    results = pl.pallas_call(
        kernel,
        grid=(n, n_ho, n_ct),
        in_specs=in_specs,
        out_specs=tuple(out_specs),
        out_shape=tuple(out_shapes),
        scratch_shapes=[
            pltpu.VMEM((2, hc, wp, cin_pad), x_pad.dtype),   # double-buffered halo slab
            pltpu.SemaphoreType.DMA((2,)),
        ],
        compiler_params=pltpu.CompilerParams(
            dimension_semantics=dim_sem, vmem_limit_bytes=vmem_limit),
    )(x_pad, w2d, b2d)

    if use_bn:
        out_flat, tile_sum, tile_ssq = results

        gamma = (jnp.ones((cout,), jnp.float32) if bn_gamma is None
                 else bn_gamma.astype(jnp.float32))
        beta = (jnp.zeros((cout,), jnp.float32) if bn_beta is None
                else bn_beta.astype(jnp.float32))
        gamma = jnp.pad(gamma, (0, cout_pad - cout))
        beta = jnp.pad(beta, (0, cout_pad - cout))

        # Train-mode BatchNorm: batch mean / biased variance over (N, H, W).
        # TODO(synk): running_mean/running_var buffer updates (momentum) and the
        # eval-mode normalization that uses them are not modeled.
        count = float(m_total)
        ch_sum = jnp.sum(tile_sum, axis=(0, 1))
        ch_ssq = jnp.sum(tile_ssq, axis=(0, 1))
        mean = ch_sum / count
        var = jnp.maximum(ch_ssq / count - mean * mean, 0.0)
        scale = gamma * jax.lax.rsqrt(var + bn_eps)
        shift = beta - mean * scale

        bn_kernel = functools.partial(_scale_shift_act_kernel, act=activation)
        out_flat = pl.pallas_call(
            bn_kernel,
            grid=(m_total // rows, n_ct),
            in_specs=[
                pl.BlockSpec((rows, ct), lambda i, c: (i, c)),
                pl.BlockSpec((1, ct), lambda i, c: (0, c)),
                pl.BlockSpec((1, ct), lambda i, c: (0, c)),
            ],
            out_specs=pl.BlockSpec((rows, ct), lambda i, c: (i, c)),
            out_shape=jax.ShapeDtypeStruct((m_total, cout_pad), in_dtype),
            compiler_params=pltpu.CompilerParams(
                dimension_semantics=("parallel", "arbitrary"),
                vmem_limit_bytes=vmem_limit),
        )(out_flat, scale.reshape(1, cout_pad), shift.reshape(1, cout_pad))
    else:
        (out_flat,) = results

    out = out_flat.reshape(n, ho, wo, cout_pad)[..., :cout]
    return jnp.transpose(out, (0, 3, 1, 2))       # NHWC -> NCHW


if __name__ == "__main__":
    key = jax.random.PRNGKey(0)
    k_x, k_w = jax.random.split(key)

    N, Cin, H, W = 2, 4, 16, 16
    Cout, K, stride = 8, 3, 1

    x = jax.random.normal(k_x, (N, Cin, H, W), jnp.float32)
    # conv.weight.data.normal_(0, 0.01); conv.bias.data.zero_()
    weight = 0.01 * jax.random.normal(k_w, (Cout, Cin, K, K), jnp.float32)
    bias = jnp.zeros((Cout,), jnp.float32)

    def conv_ref(xx):
        y = jax.lax.conv_general_dilated(
            xx, weight, (stride, stride), [(K // 2, K // 2)] * 2,
            dimension_numbers=("NCHW", "OIHW", "NCHW"))
        return y + bias[None, :, None, None]

    # path 1: conv + ReLU (use_bn=False)
    y = base_conv(x, weight, bias, stride=stride, activation="relu", use_bn=False)
    y = jax.block_until_ready(y)
    assert y.shape == (N, Cout, H, W), y.shape
    y_ref = jnp.maximum(conv_ref(x), 0.0)
    err = float(jnp.max(jnp.abs(y - y_ref)))
    assert err < 1e-4, f"conv+relu mismatch: {err}"

    # path 2: conv + BN (train-mode batch stats) + ReLU (use_bn=True)
    y_bn = base_conv(x, weight, bias, stride=stride, activation="relu", use_bn=True)
    y_bn = jax.block_until_ready(y_bn)
    assert y_bn.shape == (N, Cout, H, W), y_bn.shape
    z = conv_ref(x)
    mu = jnp.mean(z, axis=(0, 2, 3), keepdims=True)
    vv = jnp.mean((z - mu) ** 2, axis=(0, 2, 3), keepdims=True)
    y_bn_ref = jnp.maximum((z - mu) * jax.lax.rsqrt(vv + 1e-5), 0.0)
    err_bn = float(jnp.max(jnp.abs(y_bn - y_bn_ref)))
    assert err_bn < 1e-3, f"conv+bn+relu mismatch: {err_bn}"

    print("KERNEL_OK")
</pallas_src>

<mosaic_0001>
module attributes {stable_mosaic.version = 11 : i64} {
  func.func @_conv_kernel(%arg0: i32, %arg1: i32, %arg2: i32, %arg3: memref<2x18x18x128xf32, #tpu.memory_space<any>>, %arg4: memref<1152x128xf32, #tpu.memory_space<vmem>>, %arg5: memref<1x128xf32, #tpu.memory_space<vmem>>, %arg6: memref<256x128xf32, #tpu.memory_space<vmem>>, %arg7: memref<2x18x18x128xf32, #tpu.memory_space<vmem>>, %arg8: memref<2x!tpu.dma_semaphore, #tpu.memory_space<semaphore_mem>>) attributes {dimension_semantics = [#tpu.dimension_semantics<parallel>, #tpu.dimension_semantics<arbitrary>, #tpu.dimension_semantics<arbitrary>], iteration_bounds = array<i64: 2, 1, 1>, scalar_prefetch = 0 : i64, scratch_operands = 2 : i64, tpu.core_type = #tpu.core_type<tc>, window_params = [{}, {transform_indices = @transform_1, window_bounds = array<i64: 1152, 128>}, {transform_indices = @transform_2, window_bounds = array<i64: 1, 128>}, {transform_indices = @transform_3, window_bounds = array<i64: 256, 128>}]} {
    %c2_i32 = arith.constant 2 : i32
    %c0_i32 = arith.constant 0 : i32
    %0 = arith.cmpi eq, %c2_i32, %c0_i32 : i32
    %c1_i32 = arith.constant 1 : i32
    %1 = arith.select %0, %c1_i32, %c2_i32 : i32
    %2 = arith.remsi %arg1, %1 : i32
    %c0_i32_0 = arith.constant 0 : i32
    %3 = arith.cmpi ne, %2, %c0_i32_0 : i32
    %c0_i32_1 = arith.constant 0 : i32
    %4 = arith.cmpi slt, %2, %c0_i32_1 : i32
    %c0_i32_2 = arith.constant 0 : i32
    %5 = arith.cmpi slt, %1, %c0_i32_2 : i32
    %6 = arith.xori %4, %5 : i1
    %7 = arith.andi %6, %3 : i1
    %8 = arith.addi %2, %1 : i32
    %9 = arith.select %7, %8, %2 : i32
    %c0_i32_3 = arith.constant 0 : i32
    %10 = arith.cmpi eq, %arg2, %c0_i32_3 : i32
    %11 = arith.extui %10 : i1 to i32
    %c0_i32_4 = arith.constant 0 : i32
    %12 = arith.cmpi ne, %11, %c0_i32_4 : i32
    scf.if %12 {
      %c0_i32_63 = arith.constant 0 : i32
      %58 = arith.cmpi eq, %arg1, %c0_i32_63 : i32
      %59 = arith.extui %58 : i1 to i32
      %c0_i32_64 = arith.constant 0 : i32
      %60 = arith.cmpi ne, %59, %c0_i32_64 : i32
      scf.if %60 {
        %c0_i32_75 = arith.constant 0 : i32
        %71 = tpu.assume_multiple %c0_i32_75, 16 : i32
        %c0_i32_76 = arith.constant 0 : i32
        %c0_i32_77 = arith.constant 0 : i32
        %c0_i32_78 = arith.constant 0 : i32
        %c0_i32_79 = arith.constant 0 : i32
        %72 = tpu.memref_slice %arg3[%arg0, %71, %c0_i32_78, %c0_i32_79] : memref<2x18x18x128xf32, #tpu.memory_space<any>> -> memref<1x18x18x128xf32, #tpu.memory_space<any>>
        %73 = tpu.memref_squeeze %72 : memref<1x18x18x128xf32, #tpu.memory_space<any>> -> memref<18x18x128xf32, #tpu.memory_space<any>>
        %c0_i32_80 = arith.constant 0 : i32
        %c0_i32_81 = arith.constant 0 : i32
        %c0_i32_82 = arith.constant 0 : i32
        %74 = tpu.memref_slice %arg7[%c0_i32_76, %c0_i32_80, %c0_i32_81, %c0_i32_82] : memref<2x18x18x128xf32, #tpu.memory_space<vmem>> -> memref<1x18x18x128xf32, #tpu.memory_space<vmem>>
        %75 = tpu.memref_squeeze %74 : memref<1x18x18x128xf32, #tpu.memory_space<vmem>> -> memref<18x18x128xf32, #tpu.memory_space<vmem>>
        %76 = tpu.memref_slice %arg8[%c0_i32_77] : memref<2x!tpu.dma_semaphore, #tpu.memory_space<semaphore_mem>> -> memref<1x!tpu.dma_semaphore, #tpu.memory_space<semaphore_mem>>
        %77 = tpu.memref_squeeze %76 : memref<1x!tpu.dma_semaphore, #tpu.memory_space<semaphore_mem>> -> memref<!tpu.dma_semaphore, #tpu.memory_space<semaphore_mem>>
        tpu.enqueue_dma source(%73 : memref<18x18x128xf32, #tpu.memory_space<any>>) target(%75 : memref<18x18x128xf32, #tpu.memory_space<vmem>>) target_semaphore(%77 : memref<!tpu.dma_semaphore, #tpu.memory_space<semaphore_mem>>)
      } else {
      }
      %c1_i32_65 = arith.constant 1 : i32
      %61 = arith.addi %arg1, %c1_i32_65 : i32
      %c1_i32_66 = arith.constant 1 : i32
      %62 = arith.cmpi slt, %61, %c1_i32_66 : i32
      %63 = arith.extui %62 : i1 to i32
      %c0_i32_67 = arith.constant 0 : i32
      %64 = arith.cmpi ne, %63, %c0_i32_67 : i32
      scf.if %64 {
        %c1_i32_75 = arith.constant 1 : i32
        %71 = arith.addi %arg1, %c1_i32_75 : i32
        %c1_i32_76 = arith.constant 1 : i32
        %72 = arith.addi %arg1, %c1_i32_76 : i32
        %c2_i32_77 = arith.constant 2 : i32
        %c0_i32_78 = arith.constant 0 : i32
        %73 = arith.cmpi eq, %c2_i32_77, %c0_i32_78 : i32
        %c1_i32_79 = arith.constant 1 : i32
        %74 = arith.select %73, %c1_i32_79, %c2_i32_77 : i32
        %75 = arith.remsi %72, %74 : i32
        %c0_i32_80 = arith.constant 0 : i32
        %76 = arith.cmpi ne, %75, %c0_i32_80 : i32
        %c0_i32_81 = arith.constant 0 : i32
        %77 = arith.cmpi slt, %75, %c0_i32_81 : i32
        %c0_i32_82 = arith.constant 0 : i32
        %78 = arith.cmpi slt, %74, %c0_i32_82 : i32
        %79 = arith.xori %77, %78 : i1
        %80 = arith.andi %79, %76 : i1
        %81 = arith.addi %75, %74 : i32
        %82 = arith.select %80, %81, %75 : i32
        %c16_i32 = arith.constant 16 : i32
        %83 = arith.muli %71, %c16_i32 : i32
        %84 = tpu.assume_multiple %83, 16 : i32
        %c0_i32_83 = arith.constant 0 : i32
        %c0_i32_84 = arith.constant 0 : i32
        %85 = tpu.memref_slice %arg3[%arg0, %84, %c0_i32_83, %c0_i32_84] : memref<2x18x18x128xf32, #tpu.memory_space<any>> -> memref<1x18x18x128xf32, #tpu.memory_space<any>>
        %86 = tpu.memref_squeeze %85 : memref<1x18x18x128xf32, #tpu.memory_space<any>> -> memref<18x18x128xf32, #tpu.memory_space<any>>
        %c0_i32_85 = arith.constant 0 : i32
        %c0_i32_86 = arith.constant 0 : i32
        %c0_i32_87 = arith.constant 0 : i32
        %87 = tpu.memref_slice %arg7[%82, %c0_i32_85, %c0_i32_86, %c0_i32_87] : memref<2x18x18x128xf32, #tpu.memory_space<vmem>> -> memref<1x18x18x128xf32, #tpu.memory_space<vmem>>
        %88 = tpu.memref_squeeze %87 : memref<1x18x18x128xf32, #tpu.memory_space<vmem>> -> memref<18x18x128xf32, #tpu.memory_space<vmem>>
        %89 = tpu.memref_slice %arg8[%82] : memref<2x!tpu.dma_semaphore, #tpu.memory_space<semaphore_mem>> -> memref<1x!tpu.dma_semaphore, #tpu.memory_space<semaphore_mem>>
        %90 = tpu.memref_squeeze %89 : memref<1x!tpu.dma_semaphore, #tpu.memory_space<semaphore_mem>> -> memref<!tpu.dma_semaphore, #tpu.memory_space<semaphore_mem>>
        tpu.enqueue_dma source(%86 : memref<18x18x128xf32, #tpu.memory_space<any>>) target(%88 : memref<18x18x128xf32, #tpu.memory_space<vmem>>) target_semaphore(%90 : memref<!tpu.dma_semaphore, #tpu.memory_space<semaphore_mem>>)
      } else {
      }
      %c0_i32_68 = arith.constant 0 : i32
      %c0_i32_69 = arith.constant 0 : i32
      %c0_i32_70 = arith.constant 0 : i32
      %c0_i32_71 = arith.constant 0 : i32
      %65 = tpu.memref_slice %arg3[%c0_i32_68, %c0_i32_69, %c0_i32_70, %c0_i32_71] : memref<2x18x18x128xf32, #tpu.memory_space<any>> -> memref<1x18x18x128xf32, #tpu.memory_space<any>>
      %66 = tpu.memref_squeeze %65 : memref<1x18x18x128xf32, #tpu.memory_space<any>> -> memref<18x18x128xf32, #tpu.memory_space<any>>
      %c0_i32_72 = arith.constant 0 : i32
      %c0_i32_73 = arith.constant 0 : i32
      %c0_i32_74 = arith.constant 0 : i32
      %67 = tpu.memref_slice %arg7[%9, %c0_i32_72, %c0_i32_73, %c0_i32_74] : memref<2x18x18x128xf32, #tpu.memory_space<vmem>> -> memref<1x18x18x128xf32, #tpu.memory_space<vmem>>
      %68 = tpu.memref_squeeze %67 : memref<1x18x18x128xf32, #tpu.memory_space<vmem>> -> memref<18x18x128xf32, #tpu.memory_space<vmem>>
      %69 = tpu.memref_slice %arg8[%9] : memref<2x!tpu.dma_semaphore, #tpu.memory_space<semaphore_mem>> -> memref<1x!tpu.dma_semaphore, #tpu.memory_space<semaphore_mem>>
      %70 = tpu.memref_squeeze %69 : memref<1x!tpu.dma_semaphore, #tpu.memory_space<semaphore_mem>> -> memref<!tpu.dma_semaphore, #tpu.memory_space<semaphore_mem>>
      tpu.wait_dma2 semaphore(%70 : memref<!tpu.dma_semaphore, #tpu.memory_space<semaphore_mem>>) src(%66 : memref<18x18x128xf32, #tpu.memory_space<any>>) dst(%68 : memref<18x18x128xf32, #tpu.memory_space<vmem>>)
    } else {
    }
    %c0_i32_5 = arith.constant 0 : i32
    %c0_i32_6 = arith.constant 0 : i32
    %c0_i32_7 = arith.constant 0 : i32
    %13 = tpu.memref_slice %arg7[%9, %c0_i32_5, %c0_i32_6, %c0_i32_7] : memref<2x18x18x128xf32, #tpu.memory_space<vmem>> -> memref<1x18x18x128xf32, #tpu.memory_space<vmem>>
    %14 = tpu.memref_squeeze %13 : memref<1x18x18x128xf32, #tpu.memory_space<vmem>> -> memref<18x18x128xf32, #tpu.memory_space<vmem>>
    %c0 = arith.constant 0 : index
    %c0_8 = arith.constant 0 : index
    %c0_9 = arith.constant 0 : index
    %15 = vector.load %14[%c0, %c0_8, %c0_9] : memref<18x18x128xf32, #tpu.memory_space<vmem>>, vector<16x16x128xf32>
    %16 = vector.shape_cast %15 : vector<16x16x128xf32> to vector<256x128xf32>
    %c0_i32_10 = arith.constant 0 : i32
    %c0_i32_11 = arith.constant 0 : i32
    %c0_i32_12 = arith.constant 0 : i32
    %17 = tpu.memref_slice %arg7[%9, %c0_i32_10, %c0_i32_11, %c0_i32_12] : memref<2x18x18x128xf32, #tpu.memory_space<vmem>> -> memref<1x18x18x128xf32, #tpu.memory_space<vmem>>
    %18 = tpu.memref_squeeze %17 : memref<1x18x18x128xf32, #tpu.memory_space<vmem>> -> memref<18x18x128xf32, #tpu.memory_space<vmem>>
    %c0_13 = arith.constant 0 : index
    %c1 = arith.constant 1 : index
    %c0_14 = arith.constant 0 : index
    %19 = vector.load %18[%c0_13, %c1, %c0_14] : memref<18x18x128xf32, #tpu.memory_space<vmem>>, vector<16x16x128xf32>
    %20 = vector.shape_cast %19 : vector<16x16x128xf32> to vector<256x128xf32>
    %c0_i32_15 = arith.constant 0 : i32
    %c0_i32_16 = arith.constant 0 : i32
    %c0_i32_17 = arith.constant 0 : i32
    %21 = tpu.memref_slice %arg7[%9, %c0_i32_15, %c0_i32_16, %c0_i32_17] : memref<2x18x18x128xf32, #tpu.memory_space<vmem>> -> memref<1x18x18x128xf32, #tpu.memory_space<vmem>>
    %22 = tpu.memref_squeeze %21 : memref<1x18x18x128xf32, #tpu.memory_space<vmem>> -> memref<18x18x128xf32, #tpu.memory_space<vmem>>
    %c0_18 = arith.constant 0 : index
    %c2 = arith.constant 2 : index
    %c0_19 = arith.constant 0 : index
    %23 = vector.load %22[%c0_18, %c2, %c0_19] : memref<18x18x128xf32, #tpu.memory_space<vmem>>, vector<16x16x128xf32>
    %24 = vector.shape_cast %23 : vector<16x16x128xf32> to vector<256x128xf32>
    %c0_i32_20 = arith.constant 0 : i32
    %c0_i32_21 = arith.constant 0 : i32
    %c0_i32_22 = arith.constant 0 : i32
    %25 = tpu.memref_slice %arg7[%9, %c0_i32_20, %c0_i32_21, %c0_i32_22] : memref<2x18x18x128xf32, #tpu.memory_space<vmem>> -> memref<1x18x18x128xf32, #tpu.memory_space<vmem>>
    %26 = tpu.memref_squeeze %25 : memref<1x18x18x128xf32, #tpu.memory_space<vmem>> -> memref<18x18x128xf32, #tpu.memory_space<vmem>>
    %c1_23 = arith.constant 1 : index
    %c0_24 = arith.constant 0 : index
    %c0_25 = arith.constant 0 : index
    %27 = vector.load %26[%c1_23, %c0_24, %c0_25] : memref<18x18x128xf32, #tpu.memory_space<vmem>>, vector<16x16x128xf32>
    %28 = vector.shape_cast %27 : vector<16x16x128xf32> to vector<256x128xf32>
    %c0_i32_26 = arith.constant 0 : i32
    %c0_i32_27 = arith.constant 0 : i32
    %c0_i32_28 = arith.constant 0 : i32
    %29 = tpu.memref_slice %arg7[%9, %c0_i32_26, %c0_i32_27, %c0_i32_28] : memref<2x18x18x128xf32, #tpu.memory_space<vmem>> -> memref<1x18x18x128xf32, #tpu.memory_space<vmem>>
    %30 = tpu.memref_squeeze %29 : memref<1x18x18x128xf32, #tpu.memory_space<vmem>> -> memref<18x18x128xf32, #tpu.memory_space<vmem>>
    %c1_29 = arith.constant 1 : index
    %c1_30 = arith.constant 1 : index
    %c0_31 = arith.constant 0 : index
    %31 = vector.load %30[%c1_29, %c1_30, %c0_31] : memref<18x18x128xf32, #tpu.memory_space<vmem>>, vector<16x16x128xf32>
    %32 = vector.shape_cast %31 : vector<16x16x128xf32> to vector<256x128xf32>
    %c0_i32_32 = arith.constant 0 : i32
    %c0_i32_33 = arith.constant 0 : i32
    %c0_i32_34 = arith.constant 0 : i32
    %33 = tpu.memref_slice %arg7[%9, %c0_i32_32, %c0_i32_33, %c0_i32_34] : memref<2x18x18x128xf32, #tpu.memory_space<vmem>> -> memref<1x18x18x128xf32, #tpu.memory_space<vmem>>
    %34 = tpu.memref_squeeze %33 : memref<1x18x18x128xf32, #tpu.memory_space<vmem>> -> memref<18x18x128xf32, #tpu.memory_space<vmem>>
    %c1_35 = arith.constant 1 : index
    %c2_36 = arith.constant 2 : index
    %c0_37 = arith.constant 0 : index
    %35 = vector.load %34[%c1_35, %c2_36, %c0_37] : memref<18x18x128xf32, #tpu.memory_space<vmem>>, vector<16x16x128xf32>
    %36 = vector.shape_cast %35 : vector<16x16x128xf32> to vector<256x128xf32>
    %c0_i32_38 = arith.constant 0 : i32
    %c0_i32_39 = arith.constant 0 : i32
    %c0_i32_40 = arith.constant 0 : i32
    %37 = tpu.memref_slice %arg7[%9, %c0_i32_38, %c0_i32_39, %c0_i32_40] : memref<2x18x18x128xf32, #tpu.memory_space<vmem>> -> memref<1x18x18x128xf32, #tpu.memory_space<vmem>>
    %38 = tpu.memref_squeeze %37 : memref<1x18x18x128xf32, #tpu.memory_space<vmem>> -> memref<18x18x128xf32, #tpu.memory_space<vmem>>
    %c2_41 = arith.constant 2 : index
    %c0_42 = arith.constant 0 : index
    %c0_43 = arith.constant 0 : index
    %39 = vector.load %38[%c2_41, %c0_42, %c0_43] : memref<18x18x128xf32, #tpu.memory_space<vmem>>, vector<16x16x128xf32>
    %40 = vector.shape_cast %39 : vector<16x16x128xf32> to vector<256x128xf32>
    %c0_i32_44 = arith.constant 0 : i32
    %c0_i32_45 = arith.constant 0 : i32
    %c0_i32_46 = arith.constant 0 : i32
    %41 = tpu.memref_slice %arg7[%9, %c0_i32_44, %c0_i32_45, %c0_i32_46] : memref<2x18x18x128xf32, #tpu.memory_space<vmem>> -> memref<1x18x18x128xf32, #tpu.memory_space<vmem>>
    %42 = tpu.memref_squeeze %41 : memref<1x18x18x128xf32, #tpu.memory_space<vmem>> -> memref<18x18x128xf32, #tpu.memory_space<vmem>>
    %c2_47 = arith.constant 2 : index
    %c1_48 = arith.constant 1 : index
    %c0_49 = arith.constant 0 : index
    %43 = vector.load %42[%c2_47, %c1_48, %c0_49] : memref<18x18x128xf32, #tpu.memory_space<vmem>>, vector<16x16x128xf32>
    %44 = vector.shape_cast %43 : vector<16x16x128xf32> to vector<256x128xf32>
    %c0_i32_50 = arith.constant 0 : i32
    %c0_i32_51 = arith.constant 0 : i32
    %c0_i32_52 = arith.constant 0 : i32
    %45 = tpu.memref_slice %arg7[%9, %c0_i32_50, %c0_i32_51, %c0_i32_52] : memref<2x18x18x128xf32, #tpu.memory_space<vmem>> -> memref<1x18x18x128xf32, #tpu.memory_space<vmem>>
    %46 = tpu.memref_squeeze %45 : memref<1x18x18x128xf32, #tpu.memory_space<vmem>> -> memref<18x18x128xf32, #tpu.memory_space<vmem>>
    %c2_53 = arith.constant 2 : index
    %c2_54 = arith.constant 2 : index
    %c0_55 = arith.constant 0 : index
    %47 = vector.load %46[%c2_53, %c2_54, %c0_55] : memref<18x18x128xf32, #tpu.memory_space<vmem>>, vector<16x16x128xf32>
    %48 = vector.shape_cast %47 : vector<16x16x128xf32> to vector<256x128xf32>
    %49 = tpu.concatenate %16, %20, %24, %28, %32, %36, %40, %44, %48 in 1 : vector<256x128xf32>, vector<256x128xf32>, vector<256x128xf32>, vector<256x128xf32>, vector<256x128xf32>, vector<256x128xf32>, vector<256x128xf32>, vector<256x128xf32>, vector<256x128xf32> -> vector<256x1152xf32>
    %c0_56 = arith.constant 0 : index
    %c0_57 = arith.constant 0 : index
    %50 = vector.load %arg4[%c0_56, %c0_57] : memref<1152x128xf32, #tpu.memory_space<vmem>>, vector<1152x128xf32>
    %cst = arith.constant dense<0.000000e+00> : vector<256x128xf32>
    %51 = tpu.matmul %49, %50, %cst {dimension_numbers = #tpu.dot_dimension_numbers<[1], [0], [0], [1], [0, 0, 1, 1], [], []>} : vector<256x1152xf32>, vector<1152x128xf32>, vector<256x128xf32> -> vector<256x128xf32>
    %c0_58 = arith.constant 0 : index
    %c0_59 = arith.constant 0 : index
    %52 = vector.load %arg5[%c0_58, %c0_59] : memref<1x128xf32, #tpu.memory_space<vmem>>, vector<1x128xf32>
    %53 = vector.broadcast %52 : vector<1x128xf32> to vector<256x128xf32>
    %54 = arith.addf %51, %53 : vector<256x128xf32>
    %cst_60 = arith.constant 0.000000e+00 : f32
    %55 = vector.broadcast %cst_60 : f32 to vector<256x128xf32>
    %56 = arith.maximumf %54, %55 : vector<256x128xf32>
    %c0_61 = arith.constant 0 : index
    %c0_62 = arith.constant 0 : index
    %57 = vector.load %arg6[%c0_61, %c0_62] : memref<256x128xf32, #tpu.memory_space<vmem>>, vector<256x128xf32>
    tpu.vector_store %arg6[%c0_61, %c0_62], %56 {strides = array<i32>} : memref<256x128xf32, #tpu.memory_space<vmem>>, vector<256x128xf32>,
    return
  }
  func.func @transform_1(%arg0: i32, %arg1: i32, %arg2: i32) -> (i32, i32) {
    %c0_i32 = arith.constant 0 : i32
    %c0_i32_0 = arith.constant 0 : i32
    return %c0_i32, %arg2 : i32, i32
  }
  func.func @transform_2(%arg0: i32, %arg1: i32, %arg2: i32) -> (i32, i32) {
    %c0_i32 = arith.constant 0 : i32
    %c0_i32_0 = arith.constant 0 : i32
    return %c0_i32, %arg2 : i32, i32
  }
  func.func @transform_3(%arg0: i32, %arg1: i32, %arg2: i32) -> (i32, i32) {
    %c1_i32 = arith.constant 1 : i32
    %0 = arith.muli %arg0, %c1_i32 : i32
    %1 = arith.addi %0, %arg1 : i32
    %c0_i32 = arith.constant 0 : i32
    return %1, %arg2 : i32, i32
  }
}

</mosaic_0001>

<bundles_post_ra>
// kernel: tpu_custom_call.1
= control target key start
LH: loop header
LB: loop body
LE: loop exit
PB: predicated region body
PF: predicated region fallthrough
CT: control target
= control target key end

     0   :  { %8 = vsyncpa [#allocation5], 0  ;;  %s4967_s0 = inlined_call_operand.vmem [shape: f32[2,18,18,128], index: 0, kind: input, shape index: {}]   ;;  %s4968_s1 = inlined_call_operand.vmem [shape: f32[1152,128], index: 1, kind: input, shape index: {}]   ;;  %s4969_s2 = inlined_call_operand.vmem [shape: f32[1,128], index: 2, kind: input, shape index: {}]   ;;  %s4970_s3 = inlined_call_operand.hbm [shape: f32[512,128], index: 3, kind: output, shape index: {}]  }
   0x1   :  { %10 = vsyncpa [#allocation5 + $0x1], 0  ;;  %s3499_s12 = smov 0   ;;  %s3501_s13 = smov 0  }
   0x2   :  { %s3503_s14 = smov 0   ;;  %s3505_s15 = smov 0  }
   0x3   :  { %s3507_s16 = smov 0   ;;  %s3509_s17 = smov 0  }
   0x4 LB: > { %s2411_s18 = sadd.s32 4294967295, %s3473_s17   ;;  %s2412_s19 = sadd.s32 4294967294, %s3473_s17   ;;  %s3473_s17 = sphi %s3509_s17, %s16_s17   ;;  %s3469_s16 = sphi %s3507_s16, %s5117_s16   ;;  %s3465_s15 = sphi %s3505_s15, %s5116_s15   ;;  %s3461_s14 = sphi %s3503_s14, %s5115_s14   ;;  %s3457_s13 = sphi %s3501_s13, %s5114_s13   ;;  %s3453_s12 = sphi %s3499_s12, %s5113_s12  }
   0x5   : > { %s35_s20 = sadd.s32 1, %s3469_s16  ;;  %s98_s21 = sadd.s32 1, %s3461_s14 }
   0x6   : > { %p37_p0 = scmp.ge.s32.totalorder %s35_s20, 2  ;;  %p108_p1 = scmp.ne.s32.totalorder %s3461_s14, %s3457_s13 }
   0x7   : > { %p109_p2 = scmp.eq.s32.totalorder %s2411_s18, 1  ;;  %p114_p3 = scmp.ne.s32.totalorder %s3457_s13, %s3453_s12 }
   0x8   : > { %s5119_s20 = smov (%p37_p0, %s35_s20), 0  ;;  %p115_p5 = scmp.eq.s32.totalorder %s2412_s19, 1 }
   0x9   : > { %p3539_p4 = por %p109_p2, %p108_p1  ;;  %s93_s23 = ssub.s32 %s3469_s16, %s5119_s20 }
   0xa   : > { %p2416_p6 = scmp.ge.s32.totalorder %s3473_s17, 1  ;;  %p96_p7 = scmp.eq.s32.totalorder %s93_s23, 0 }
   0xb   : > { %p3546_p8 = por %p115_p5, %p114_p3  ;;  %p146_p9 = scmp.lt.s32.totalorder %s3473_s17, 3 }
   0xc   : > { %s3552_s25 = scalar_select %p96_p7, %s3461_s14, %s98_s21  }
   0xd   : > { %p147_p10 = pnand %p2416_p6, %p146_p9 }
   0xf   : > { %150 = sbr.rel (%p147_p10) target bundleno = 642 (0x282), region = 28 }
  0x16   : > { %s167_s26 = sand.u32 1, %s3457_s13   ;;  %s200_s27 = smul.u32 432, %s3465_s15 }
  0x17   : > { %s3558_s28 = sshll.u32 %s167_s26, 8 }
  0x18   : > { %s3563_s4 = scalar_lea.vmem %s4967_s0, %s200_s27  ;;  %s3620_s5 = scalar_lea.vmem [#allocation4], %s3558_s28 }
  0x19   : > { %v274_v0 = vld [vmem:[%s3563_s4] sm:$0xff]  ;;  %v276_v1 = vld [vmem:[%s3563_s4 + $0x8] sm:$0xff]  ;;  %v278_v2 = vld [vmem:[%s3563_s4 + $0x18] sm:$0xff] }
  0x1a   : > { %275 = vst [vmem:[#allocation2] sm:$0xff] %v274_v0  ;;  %277 = vst [vmem:[#allocation2 + $0x8] sm:$0xff] %v276_v1  ;;  %v280_v3 = vld [vmem:[%s3563_s4 + $0x20] sm:$0xff]  ;;  %v282_v4 = vld [vmem:[%s3563_s4 + $0x30] sm:$0xff] }
  0x1b   : > { %279 = vst [vmem:[#allocation2 + $0x18] sm:$0xff] %v278_v2  ;;  %v284_v5 = vld [vmem:[%s3563_s4 + $0x38] sm:$0xff]  ;;  %281 = vst [vmem:[#allocation2 + $0x20] sm:$0xff] %v280_v3  ;;  %v286_v6 = vld [vmem:[%s3563_s4 + $0x48] sm:$0xff] }
  0x1c   : > { %283 = vst [vmem:[#allocation2 + $0x30] sm:$0xff] %v282_v4  ;;  %285 = vst [vmem:[#allocation2 + $0x38] sm:$0xff] %v284_v5  ;;  %v288_v7 = vld [vmem:[%s3563_s4 + $0x50] sm:$0xff]  ;;  %v290_v8 = vld [vmem:[%s3563_s4 + $0x60] sm:$0xff] }
  0x1d   : > { %287 = vst [vmem:[#allocation2 + $0x48] sm:$0xff] %v286_v6  ;;  %289 = vst [vmem:[#allocation2 + $0x50] sm:$0xff] %v288_v7  ;;  %v292_v9 = vld [vmem:[%s3563_s4 + $0x68] sm:$0xff]  ;;  %v294_v10 = vld [vmem:[%s3563_s4 + $0x78] sm:$0xff] }
  0x1e   : > { %291 = vst [vmem:[#allocation2 + $0x60] sm:$0xff] %v290_v8  ;;  %v296_v11 = vld [vmem:[%s3563_s4 + $0x80] sm:$0xff]  ;;  %293 = vst [vmem:[#allocation2 + $0x68] sm:$0xff] %v292_v9  ;;  %v298_v12 = vld [vmem:[%s3563_s4 + $0x90] sm:$0xff] }
  0x1f   : > { %295 = vst [vmem:[#allocation2 + $0x78] sm:$0xff] %v294_v10  ;;  %297 = vst [vmem:[#allocation2 + $0x80] sm:$0xff] %v296_v11  ;;  %v300_v13 = vld [vmem:[%s3563_s4 + $0x98] sm:$0xff]  ;;  %v302_v14 = vld [vmem:[%s3563_s4 + $0xa8] sm:$0xff] }
  0x20   : > { %299 = vst [vmem:[#allocation2 + $0x90] sm:$0xff] %v298_v12  ;;  %301 = vst [vmem:[#allocation2 + $0x98] sm:$0xff] %v300_v13  ;;  %v304_v15 = vld [vmem:[%s3563_s4 + $0xb0] sm:$0xff]  ;;  %v306_v16 = vld [vmem:[%s3563_s4 + $0xc0] sm:$0xff] }
  0x21   : > { %303 = vst [vmem:[#allocation2 + $0xa8] sm:$0xff] %v302_v14  ;;  %v308_v17 = vld [vmem:[%s3563_s4 + $0xc8] sm:$0xff]  ;;  %305 = vst [vmem:[#allocation2 + $0xb0] sm:$0xff] %v304_v15  ;;  %v310_v18 = vld [vmem:[%s3563_s4 + $0xd8] sm:$0xff] }
  0x22   : > { %307 = vst [vmem:[#allocation2 + $0xc0] sm:$0xff] %v306_v16  ;;  %309 = vst [vmem:[#allocation2 + $0xc8] sm:$0xff] %v308_v17  ;;  %v312_v19 = vld [vmem:[%s3563_s4 + $0xe0] sm:$0xff]  ;;  %v314_v20 = vld [vmem:[%s3563_s4 + $0xf0] sm:$0xff] }
  0x23   : > { %311 = vst [vmem:[#allocation2 + $0xd8] sm:$0xff] %v310_v18  ;;  %313 = vst [vmem:[#allocation2 + $0xe0] sm:$0xff] %v312_v19  ;;  %v316_v21 = vld [vmem:[%s3563_s4 + $0xf8] sm:$0xff]  ;;  %v318_v22 = vld [vmem:[%s3563_s4 + $0x108] sm:$0xff] }
  0x24   : > { %315 = vst [vmem:[#allocation2 + $0xf0] sm:$0xff] %v314_v20  ;;  %v320_v23 = vld [vmem:[%s3563_s4 + $0x110] sm:$0xff]  ;;  %317 = vst [vmem:[#allocation2 + $0xf8] sm:$0xff] %v316_v21  ;;  %v322_v24 = vld [vmem:[%s3563_s4 + $0x120] sm:$0xff] }
  0x25   : > { %319 = vst [vmem:[#allocation2 + $0x108] sm:$0xff] %v318_v22  ;;  %321 = vst [vmem:[#allocation2 + $0x110] sm:$0xff] %v320_v23  ;;  %v324_v25 = vld [vmem:[%s3563_s4 + $0x128] sm:$0xff]  ;;  %v326_v26 = vld [vmem:[%s3563_s4 + $0x138] sm:$0xff] }
  0x26   : > { %323 = vst [vmem:[#allocation2 + $0x120] sm:$0xff] %v322_v24  ;;  %325 = vst [vmem:[#allocation2 + $0x128] sm:$0xff] %v324_v25  ;;  %v328_v27 = vld [vmem:[%s3563_s4 + $0x140] sm:$0xff]  ;;  %v330_v28 = vld [vmem:[%s3563_s4 + $0x150] sm:$0xff] }
  0x27   : > { %327 = vst [vmem:[#allocation2 + $0x138] sm:$0xff] %v326_v26  ;;  %v332_v29 = vld [vmem:[%s3563_s4 + $0x158] sm:$0xff]  ;;  %329 = vst [vmem:[#allocation2 + $0x140] sm:$0xff] %v328_v27  ;;  %v334_v30 = vld [vmem:[%s3563_s4 + $0x168] sm:$0xff] }
  0x28   : > { %331 = vst [vmem:[#allocation2 + $0x150] sm:$0xff] %v330_v28  ;;  %333 = vst [vmem:[#allocation2 + $0x158] sm:$0xff] %v332_v29  ;;  %v336_v31 = vld [vmem:[%s3563_s4 + $0x170] sm:$0xff]  ;;  %v338_v32 = vld [vmem:[%s3563_s4 + $0x180] sm:$0xff] }
  0x29   : > { %335 = vst [vmem:[#allocation2 + $0x168] sm:$0xff] %v334_v30  ;;  %337 = vst [vmem:[#allocation2 + $0x170] sm:$0xff] %v336_v31  ;;  %v340_v33 = vld [vmem:[%s3563_s4 + $0x188] sm:$0xff]  ;;  %v342_v34 = vld [vmem:[%s3563_s4 + $0x198] sm:$0xff] }
  0x2a   : > { %339 = vst [vmem:[#allocation2 + $0x180] sm:$0xff] %v338_v32  ;;  %v344_v35 = vld [vmem:[%s3563_s4 + $0x1a0] sm:$0xff]  ;;  %341 = vst [vmem:[#allocation2 + $0x188] sm:$0xff] %v340_v33  ;;  %v2418_v36 = vld [vmem:[%s3563_s4 + $0x10] sm:$0x3] }
  0x2b   : > { %343 = vst [vmem:[#allocation2 + $0x198] sm:$0xff] %v342_v34  ;;  %345 = vst [vmem:[#allocation2 + $0x1a0] sm:$0xff] %v344_v35  ;;  %v2419_v37 = vld [vmem:[%s3563_s4 + $0x28] sm:$0x3]  ;;  %v2420_v38 = vld [vmem:[%s3563_s4 + $0x40] sm:$0x3] }
  0x2c   : > { %356 = vst [vmem:[#allocation2 + $0x10] sm:$0x3] %v2418_v36  ;;  %358 = vst [vmem:[#allocation2 + $0x28] sm:$0x3] %v2419_v37  ;;  %v2421_v39 = vld [vmem:[%s3563_s4 + $0x58] sm:$0x3] }
  0x2d   : > { %360 = vst [vmem:[#allocation2 + $0x40] sm:$0x3] %v2420_v38  ;;  %v2422_v40 = vld [vmem:[%s3563_s4 + $0x70] sm:$0x3]  ;;  %v2423_v41 = vld [vmem:[%s3563_s4 + $0x88] sm:$0x3] }
  0x2e   : > { %362 = vst [vmem:[#allocation2 + $0x58] sm:$0x3] %v2421_v39  ;;  %364 = vst [vmem:[#allocation2 + $0x70] sm:$0x3] %v2422_v40  ;;  %v2424_v42 = vld [vmem:[%s3563_s4 + $0xa0] sm:$0x3] }
  0x2f   : > { %366 = vst [vmem:[#allocation2 + $0x88] sm:$0x3] %v2423_v41  ;;  %v2425_v43 = vld [vmem:[%s3563_s4 + $0xb8] sm:$0x3]  ;;  %v2426_v44 = vld [vmem:[%s3563_s4 + $0xd0] sm:$0x3] }
  0x30   : > { %368 = vst [vmem:[#allocation2 + $0xa0] sm:$0x3] %v2424_v42  ;;  %370 = vst [vmem:[#allocation2 + $0xb8] sm:$0x3] %v2425_v43  ;;  %v2427_v45 = vld [vmem:[%s3563_s4 + $0xe8] sm:$0x3] }
  0x31   : > { %372 = vst [vmem:[#allocation2 + $0xd0] sm:$0x3] %v2426_v44  ;;  %v2428_v46 = vld [vmem:[%s3563_s4 + $0x100] sm:$0x3]  ;;  %v2429_v47 = vld [vmem:[%s3563_s4 + $0x118] sm:$0x3] }
  0x32   : > { %374 = vst [vmem:[#allocation2 + $0xe8] sm:$0x3] %v2427_v45  ;;  %376 = vst [vmem:[#allocation2 + $0x100] sm:$0x3] %v2428_v46  ;;  %v2430_v48 = vld [vmem:[%s3563_s4 + $0x130] sm:$0x3] }
  0x33   : > { %378 = vst [vmem:[#allocation2 + $0x118] sm:$0x3] %v2429_v47  ;;  %v2431_v49 = vld [vmem:[%s3563_s4 + $0x148] sm:$0x3]  ;;  %v2432_v50 = vld [vmem:[%s3563_s4 + $0x160] sm:$0x3] }
  0x34   : > { %380 = vst [vmem:[#allocation2 + $0x130] sm:$0x3] %v2430_v48  ;;  %382 = vst [vmem:[#allocation2 + $0x148] sm:$0x3] %v2431_v49  ;;  %v2433_v51 = vld [vmem:[%s3563_s4 + $0x178] sm:$0x3] }
  0x35   : > { %384 = vst [vmem:[#allocation2 + $0x160] sm:$0x3] %v2432_v50  ;;  %v2434_v52 = vld [vmem:[%s3563_s4 + $0x190] sm:$0x3]  ;;  %v2435_v53 = vld [vmem:[%s3563_s4 + $0x1a8] sm:$0x3] }
  0x36   : > { %386 = vst [vmem:[#allocation2 + $0x178] sm:$0x3] %v2433_v51  ;;  %388 = vst [vmem:[#allocation2 + $0x190] sm:$0x3] %v2434_v52 }
  0x37   : > { %390 = vst [vmem:[#allocation2 + $0x1a8] sm:$0x3] %v2435_v53 }
  0x38   : > { %394 = vsyncadd [#allocation3], 5184 }
  0x39   : > { %3445 = dma.done.wait [#allocation3], 5184 }
  0x3a   : > { %3446 = vsyncadd [#allocation3], 4294962112  ;;  %v4971_v54 = vmov 0.0|0.0   ;;  %v909_v55 = vld [vmem:[%s4968_s1] sm:$0xff]  ;;  %v910_v56 = vld [vmem:[%s4968_s1 + $0x8] sm:$0xff]  ;;  %s2782_s11 = sshll.u32 %s3465_s15, 12 }
  0x3b   : > { %2911 = vmatprep.subr.bf16.mxu1 %v4971_v54  ;;  %2959 = vmatprep.subr.bf16.mxu0 %v4971_v54  ;;  %v941_v57 = vld [vmem:[%s4968_s1 + $0x100] sm:$0xff]  ;;  %v2912_v58 = vpack.c.bf16 %v910_v56, %v909_v55  ;;  %v942_v59 = vld [vmem:[%s4968_s1 + $0x108] sm:$0xff]  ;;  %v911_v60 = vld [vmem:[%s4968_s1 + $0x10] sm:$0xff]  ;;  %s2265_s18 = sshll.u32 %s3620_s5, 4  ;;  %s4913_s23 = scalar_lea.hbm %s4970_s3, %s2782_s11  ;;  %s4915_s18 = int_to_ptr.vmem [resolvable:$true] %s2265_s18 }
  0x3c   : > { %v912_v61 = vld [vmem:[%s4968_s1 + $0x18] sm:$0xff]  ;;  %v2960_v62 = vpack.c.bf16 %v942_v59, %v941_v57  ;;  %v943_v63 = vld [vmem:[%s4968_s1 + $0x110] sm:$0xff]  ;;  %v913_v3 = vld [vmem:[%s4968_s1 + $0x20] sm:$0xff]  ;;  %s4921_s15 = scalar_lea.sflag [#allocation5], %s167_s26  ;;  %s3393_s27 = scalar_lea.vmem %s4915_s18, 4096 }
  0x3d   : > { %v944_v0 = vld [vmem:[%s4968_s1 + $0x118] sm:$0xff]  ;;  %2913 = vmatpush1.bf16.msra.mxu1 %v2912_v58  ;;  %v2915_v1 = vpack.c.bf16 %v912_v61, %v911_v60  ;;  %v914_v4 = vld [vmem:[%s4968_s1 + $0x28] sm:$0xff]  ;;  %v945_v5 = vld [vmem:[%s4968_s1 + $0x120] sm:$0xff]  ;;  %p3394_p11 = scmp.ne.s32.totalorder %s4915_s18, %s3393_s27  ;;  %s3476_s28 = smov [#allocation4]  }
  0x3e   : > { %2961 = vmatpush1.bf16.msra.mxu0 %v2960_v62  ;;  %2914 = vmatprep.subr.bf16.mxu1 %v4971_v54  ;;  %v2963_v2 = vpack.c.bf16 %v944_v0, %v943_v63  ;;  %v946_v6 = vld [vmem:[%s4968_s1 + $0x128] sm:$0xff]  ;;  %v2918_v7 = vpack.c.bf16 %v914_v4, %v913_v3  ;;  %v915_v9 = vld [vmem:[%s4968_s1 + $0x30] sm:$0xff]  ;;  %v916_v10 = vld [vmem:[%s4968_s1 + $0x38] sm:$0xff]  ;;  %s3397_s29 = sshll.u32 %s3476_s28, 4  ;;  %s3398_s29 = int_to_ptr.vmem [resolvable:$false] %s3397_s29 }
  0x3f   : > { %2962 = vmatprep.subr.bf16.mxu0 %v4971_v54  ;;  %v2966_v8 = vpack.c.bf16 %v946_v6, %v945_v5  ;;  %v947_v11 = vld [vmem:[%s4968_s1 + $0x130] sm:$0xff]  ;;  %v948_v12 = vld [vmem:[%s4968_s1 + $0x138] sm:$0xff]  ;;  %v2921_v13 = vpack.c.bf16 %v916_v10, %v915_v9  ;;  %v917_v15 = vld [vmem:[%s4968_s1 + $0x40] sm:$0xff]  ;;  %p3395_p12 = pnand %p3394_p11, %p3539_p4  ;;  %s3399_s30 = scalar_lea.vmem %s3398_s29, 8192 }
  0x40   : > { %v2969_v14 = vpack.c.bf16 %v948_v12, %v947_v11  ;;  %v918_v16 = vld [vmem:[%s4968_s1 + $0x48] sm:$0xff]  ;;  %v949_v17 = vld [vmem:[%s4968_s1 + $0x140] sm:$0xff]  ;;  %v919_v21 = vld [vmem:[%s4968_s1 + $0x50] sm:$0xff]  ;;  %p3400_p0 = scmp.lt.s32.totalorder %s4915_s18, %s3398_s29  ;;  %p3401_p1 = scmp.lt.s32.totalorder %s3399_s30, %s3393_s27 }
  0x41   : > { %2916 = vmatpush1.bf16.msra.mxu1 %v2915_v1  ;;  %v950_v18 = vld [vmem:[%s4968_s1 + $0x148] sm:$0xff]  ;;  %v2924_v19 = vpack.c.bf16 %v918_v16, %v917_v15  ;;  %v920_v22 = vld [vmem:[%s4968_s1 + $0x58] sm:$0xff]  ;;  %v951_v23 = vld [vmem:[%s4968_s1 + $0x150] sm:$0xff]  ;;  %p3396_p13 = pneg %p3395_p12 }
  0x42   : > { %2964 = vmatpush1.bf16.msra.mxu0 %v2963_v2  ;;  %2917 = vmatprep.subr.bf16.mxu1 %v4971_v54  ;;  %v2972_v20 = vpack.c.bf16 %v950_v18, %v949_v17  ;;  %v952_v24 = vld [vmem:[%s4968_s1 + $0x158] sm:$0xff]  ;;  %v2927_v25 = vpack.c.bf16 %v920_v22, %v919_v21  ;;  %v921_v27 = vld [vmem:[%s4968_s1 + $0x60] sm:$0xff]  ;;  %v922_v28 = vld [vmem:[%s4968_s1 + $0x68] sm:$0xff]  ;;  %p3402_p2 = por %p3401_p1, %p3400_p0 }
  0x43   : > { %2965 = vmatprep.subr.bf16.mxu0 %v4971_v54  ;;  %v2975_v26 = vpack.c.bf16 %v952_v24, %v951_v23  ;;  %v953_v29 = vld [vmem:[%s4968_s1 + $0x160] sm:$0xff]  ;;  %v954_v30 = vld [vmem:[%s4968_s1 + $0x168] sm:$0xff]  ;;  %v3718_v32 = vld [vmem:[#allocation2 + $0x18] sm:$0xff]  ;;  %v2930_v33 = vpack.c.bf16 %v922_v28, %v921_v27 }
  0x44   : > { %v651_v31 = vld [vmem:[#allocation2 + $0x1] sm:$0xff]  ;;  %1349 = vmatprep.mubr.f32.mxu0 %v3718_v32  ;;  %v2978_v34 = vpack.c.bf16 %v954_v30, %v953_v29  ;;  %v923_v35 = vld [vmem:[%s4968_s1 + $0x70] sm:$0xff]  ;;  %v924_v36 = vld [vmem:[%s4968_s1 + $0x78] sm:$0xff]  ;;  %p3403_p3 = pnand %p3402_p2, %p3396_p13 }
  0x45   : > { %2919 = vmatpush1.bf16.msra.mxu1 %v2918_v7  ;;  %1124 = vmatprep.mubr.f32.mxu1 %v651_v31  ;;  %v955_v37 = vld [vmem:[%s4968_s1 + $0x170] sm:$0xff]  ;;  %v956_v38 = vld [vmem:[%s4968_s1 + $0x178] sm:$0xff]  ;;  %v2933_v39 = vpack.c.bf16 %v924_v36, %v923_v35  ;;  %v925_v41 = vld [vmem:[%s4968_s1 + $0x80] sm:$0xff] }
  0x46   : > { %2967 = vmatpush1.bf16.msra.mxu0 %v2966_v8  ;;  %2920 = vmatprep.subr.bf16.mxu1 %v4971_v54  ;;  %v2981_v40 = vpack.c.bf16 %v956_v38, %v955_v37  ;;  %v926_v42 = vld [vmem:[%s4968_s1 + $0x88] sm:$0xff]  ;;  %v957_v43 = vld [vmem:[%s4968_s1 + $0x180] sm:$0xff]  ;;  %v927_v47 = vld [vmem:[%s4968_s1 + $0x90] sm:$0xff] }
  0x47   : > { %2968 = vmatprep.subr.bf16.mxu0 %v4971_v54  ;;  %v958_v44 = vld [vmem:[%s4968_s1 + $0x188] sm:$0xff]  ;;  %v2936_v45 = vpack.c.bf16 %v926_v42, %v925_v41  ;;  %v928_v48 = vld [vmem:[%s4968_s1 + $0x98] sm:$0xff]  ;;  %v959_v49 = vld [vmem:[%s4968_s1 + $0x190] sm:$0xff] }
  0x48   : > { %v2984_v46 = vpack.c.bf16 %v958_v44, %v957_v43  ;;  %v960_v50 = vld [vmem:[%s4968_s1 + $0x198] sm:$0xff]  ;;  %v2939_v51 = vpack.c.bf16 %v928_v48, %v927_v47  ;;  %v929_v53 = vld [vmem:[%s4968_s1 + $0xa0] sm:$0xff]  ;;  %v930_v55 = vld [vmem:[%s4968_s1 + $0xa8] sm:$0xff] }
  0x49   : > { %2922 = vmatpush1.bf16.msra.mxu1 %v2921_v13  ;;  %v2987_v52 = vpack.c.bf16 %v960_v50, %v959_v49  ;;  %v961_v56 = vld [vmem:[%s4968_s1 + $0x1a0] sm:$0xff]  ;;  %v962_v57 = vld [vmem:[%s4968_s1 + $0x1a8] sm:$0xff]  ;;  %v2942_v58 = vpack.c.bf16 %v930_v55, %v929_v53  ;;  %v931_v60 = vld [vmem:[%s4968_s1 + $0xb0] sm:$0xff] }
  0x4a   : > { %2970 = vmatpush1.bf16.msra.mxu0 %v2969_v14  ;;  %2923 = vmatprep.subr.bf16.mxu1 %v4971_v54  ;;  %v2990_v59 = vpack.c.bf16 %v962_v57, %v961_v56  ;;  %v932_v61 = vld [vmem:[%s4968_s1 + $0xb8] sm:$0xff]  ;;  %v963_v62 = vld [vmem:[%s4968_s1 + $0x1b0] sm:$0xff]  ;;  %v933_v2 = vld [vmem:[%s4968_s1 + $0xc0] sm:$0xff] }
  0x4b   : > { %2971 = vmatprep.subr.bf16.mxu0 %v4971_v54  ;;  %v964_v63 = vld [vmem:[%s4968_s1 + $0x1b8] sm:$0xff]  ;;  %v2945_v0 = vpack.c.bf16 %v932_v61, %v931_v60  ;;  %v934_v3 = vld [vmem:[%s4968_s1 + $0xc8] sm:$0xff]  ;;  %v965_v4 = vld [vmem:[%s4968_s1 + $0x1c0] sm:$0xff] }
  0x4c   : > { %v2993_v1 = vpack.c.bf16 %v964_v63, %v963_v62  ;;  %v966_v5 = vld [vmem:[%s4968_s1 + $0x1c8] sm:$0xff]  ;;  %v2948_v6 = vpack.c.bf16 %v934_v3, %v933_v2  ;;  %v935_v8 = vld [vmem:[%s4968_s1 + $0xd0] sm:$0xff]  ;;  %v936_v9 = vld [vmem:[%s4968_s1 + $0xd8] sm:$0xff] }
  0x4d   : > { %2925 = vmatpush1.bf16.msra.mxu1 %v2924_v19  ;;  %v2996_v7 = vpack.c.bf16 %v966_v5, %v965_v4  ;;  %v967_v10 = vld [vmem:[%s4968_s1 + $0x1d0] sm:$0xff]  ;;  %v968_v11 = vld [vmem:[%s4968_s1 + $0x1d8] sm:$0xff]  ;;  %v2951_v12 = vpack.c.bf16 %v936_v9, %v935_v8  ;;  %v937_v14 = vld [vmem:[%s4968_s1 + $0xe0] sm:$0xff] }
  0x4e   : > { %2973 = vmatpush1.bf16.msra.mxu0 %v2972_v20  ;;  %2926 = vmatprep.subr.bf16.mxu1 %v4971_v54  ;;  %v2999_v13 = vpack.c.bf16 %v968_v11, %v967_v10  ;;  %v938_v15 = vld [vmem:[%s4968_s1 + $0xe8] sm:$0xff]  ;;  %v969_v16 = vld [vmem:[%s4968_s1 + $0x1e0] sm:$0xff]  ;;  %v939_v20 = vld [vmem:[%s4968_s1 + $0xf0] sm:$0xff] }
  0x4f   : > { %2974 = vmatprep.subr.bf16.mxu0 %v4971_v54  ;;  %v970_v17 = vld [vmem:[%s4968_s1 + $0x1e8] sm:$0xff]  ;;  %v2954_v18 = vpack.c.bf16 %v938_v15, %v937_v14  ;;  %v940_v21 = vld [vmem:[%s4968_s1 + $0xf8] sm:$0xff]  ;;  %v971_v22 = vld [vmem:[%s4968_s1 + $0x1f0] sm:$0xff] }
  0x50   : > { %v3002_v19 = vpack.c.bf16 %v970_v17, %v969_v16  ;;  %v972_v23 = vld [vmem:[%s4968_s1 + $0x1f8] sm:$0xff]  ;;  %v2957_v24 = vpack.c.bf16 %v940_v21, %v939_v20  ;;  %v1006_v27 = vld [vmem:[%s4968_s1 + $0x308] sm:$0xff]  ;;  %v973_v28 = vld [vmem:[%s4968_s1 + $0x200] sm:$0xff] }
  0x51   : > { %2928 = vmatpush1.bf16.msra.mxu1 %v2927_v25  ;;  %v3005_v25 = vpack.c.bf16 %v972_v23, %v971_v22  ;;  %v974_v29 = vld [vmem:[%s4968_s1 + $0x208] sm:$0xff]  ;;  %v619_v30 = vld [vmem:[#allocation2] sm:$0xff]  ;;  %v975_v36 = vld [vmem:[%s4968_s1 + $0x210] sm:$0xff] }
  0x52   : > { %2976 = vmatpush1.bf16.msra.mxu0 %v2975_v26  ;;  %2929 = vmatprep.subr.bf16.mxu1 %v4971_v54  ;;  %v1005_v26 = vld [vmem:[%s4968_s1 + $0x300] sm:$0xff]  ;;  %v652_v35 = vld [vmem:[#allocation2 + $0x9] sm:$0xff]  ;;  %v976_v37 = vld [vmem:[%s4968_s1 + $0x218] sm:$0xff] }
  0x53   : > { %2977 = vmatprep.subr.bf16.mxu0 %v4971_v54  ;;  %v3861_v31 = vpack.c.bf16 %v1006_v27, %v1005_v26  ;;  %v2583_v38 = vld [vmem:[#allocation2 + $0x20] sm:$0xff]  ;;  %v620_v41 = vld [vmem:[#allocation2 + $0x8] sm:$0xff]  ;;  %v3011_v44 = vpack.c.bf16 %v976_v37, %v975_v36  ;;  %v2585_v55 = vld [vmem:[#allocation2 + $0x38] sm:$0xff] }
  0x54   : > { %v684_v42 = vld [vmem:[#allocation2 + $0xa] sm:$0xff]  ;;  %v3878_v43 = vld [vmem:[#allocation2 + $0x19] sm:$0xff]  ;;  %v3921_v61 = vld [vmem:[#allocation2 + $0x22] sm:$0xff] }
  0x55   : > { %2931 = vmatpush1.bf16.msra.mxu1 %v2930_v33  ;;  %v683_v33 = vld [vmem:[#allocation2 + $0x2] sm:$0xff]  ;;  %v979_v57 = vld [vmem:[%s4968_s1 + $0x230] sm:$0xff]  ;;  %v1012_v60 = vld [vmem:[%s4968_s1 + $0x338] sm:$0xff] }
  0x56   : > { %2979 = vmatpush1.bf16.msra.mxu0 %v2978_v34  ;;  %2932 = vmatprep.subr.bf16.mxu1 %v4971_v54  ;;  %v3008_v34 = vpack.c.bf16 %v974_v29, %v973_v28  ;;  %v977_v47 = vld [vmem:[%s4968_s1 + $0x220] sm:$0xff]  ;;  %v978_v48 = vld [vmem:[%s4968_s1 + $0x228] sm:$0xff]  ;;  %v3923_v62 = vld [vmem:[#allocation2 + $0x31] sm:$0xff] }
  0x57   : > { %2980 = vmatprep.subr.bf16.mxu0 %v4971_v54  ;;  %v1009_v49 = vld [vmem:[%s4968_s1 + $0x320] sm:$0xff]  ;;  %v1010_v50 = vld [vmem:[%s4968_s1 + $0x328] sm:$0xff]  ;;  %v3014_v53 = vpack.c.bf16 %v978_v48, %v977_v47  ;;  %v3944_v5 = vld [vmem:[#allocation2 + $0x32] sm:$0xff] }
  0x58   : > { %v3903_v56 = vpack.c.bf16 %v1010_v50, %v1009_v49  ;;  %v2586_v63 = vld [vmem:[#allocation2 + $0x48] sm:$0xff]  ;;  %v1013_v3 = vld [vmem:[%s4968_s1 + $0x340] sm:$0xff]  ;;  %v2587_v8 = vld [vmem:[#allocation2 + $0x50] sm:$0xff] }
  0x59   : > { %2934 = vmatpush1.bf16.msra.mxu1 %v2933_v39  ;;  %v1007_v39 = vld [vmem:[%s4968_s1 + $0x310] sm:$0xff]  ;;  %v982_v2 = vld [vmem:[%s4968_s1 + $0x248] sm:$0xff]  ;;  %v984_v11 = vld [vmem:[%s4968_s1 + $0x258] sm:$0xff] }
  0x5a   : > { %2982 = vmatpush1.bf16.msra.mxu0 %v2981_v40  ;;  %2935 = vmatprep.subr.bf16.mxu1 %v4971_v54  ;;  %v1008_v40 = vld [vmem:[%s4968_s1 + $0x318] sm:$0xff]  ;;  %v1014_v4 = vld [vmem:[%s4968_s1 + $0x348] sm:$0xff]  ;;  %v983_v10 = vld [vmem:[%s4968_s1 + $0x250] sm:$0xff] }
  0x5b   : > { %2983 = vmatprep.subr.bf16.mxu0 %v4971_v54  ;;  %v3950_v9 = vpack.c.bf16 %v1014_v4, %v1013_v3  ;;  %v3967_v14 = vld [vmem:[#allocation2 + $0x3a] sm:$0xff]  ;;  %v3969_v15 = vld [vmem:[#allocation2 + $0x49] sm:$0xff]  ;;  %v3023_v16 = vpack.c.bf16 %v984_v11, %v983_v10 }
  0x5c   : > { %v2588_v17 = vld [vmem:[#allocation2 + $0x60] sm:$0xff]  ;;  %v986_v20 = vld [vmem:[%s4968_s1 + $0x268] sm:$0xff]  ;;  %v987_v28 = vld [vmem:[%s4968_s1 + $0x270] sm:$0xff] }
  0x5d   : > { %2937 = vmatpush1.bf16.msra.mxu1 %v2936_v45  ;;  %v2584_v45 = vld [vmem:[#allocation2 + $0x30] sm:$0xff]  ;;  %v1017_v21 = vld [vmem:[%s4968_s1 + $0x360] sm:$0xff]  ;;  %v1018_v22 = vld [vmem:[%s4968_s1 + $0x368] sm:$0xff] }
  0x5e   : > { %2985 = vmatpush1.bf16.msra.mxu0 %v2984_v46  ;;  %2938 = vmatprep.subr.bf16.mxu1 %v4971_v54  ;;  %v3881_v46 = vpack.c.bf16 %v1008_v40, %v1007_v39  ;;  %v3990_v23 = vld [vmem:[#allocation2 + $0x4a] sm:$0xff]  ;;  %v3996_v27 = vpack.c.bf16 %v1018_v22, %v1017_v21  ;;  %v988_v29 = vld [vmem:[%s4968_s1 + $0x278] sm:$0xff]  ;;  %v989_v39 = vld [vmem:[%s4968_s1 + $0x280] sm:$0xff] }
  0x5f   : > { %2986 = vmatprep.subr.bf16.mxu0 %v4971_v54  ;;  %v2589_v26 = vld [vmem:[#allocation2 + $0x68] sm:$0xff]  ;;  %v3029_v36 = vpack.c.bf16 %v988_v29, %v987_v28  ;;  %v2590_v37 = vld [vmem:[#allocation2 + $0x78] sm:$0xff]  ;;  %v2591_v48 = vld [vmem:[#allocation2 + $0x80] sm:$0xff] }
  0x60   : > { %v990_v40 = vld [vmem:[%s4968_s1 + $0x288] sm:$0xff]  ;;  %v991_v50 = vld [vmem:[%s4968_s1 + $0x290] sm:$0xff]  ;;  %v1025_v3 = vld [vmem:[%s4968_s1 + $0x3a0] sm:$0xff] }
  0x61   : > { %2940 = vmatpush1.bf16.msra.mxu1 %v2939_v51  ;;  %v3897_v51 = vld [vmem:[#allocation2 + $0x1a] sm:$0xff]  ;;  %v3032_v47 = vpack.c.bf16 %v990_v40, %v989_v39  ;;  %v1026_v4 = vld [vmem:[%s4968_s1 + $0x3a8] sm:$0xff]  ;;  %v4113_v21 = vld [vmem:[#allocation2 + $0x91] sm:$0xff] }
  0x62   : > { %2988 = vmatpush1.bf16.msra.mxu0 %v2987_v52  ;;  %2941 = vmatprep.subr.bf16.mxu1 %v4971_v54  ;;  %v3899_v52 = vld [vmem:[#allocation2 + $0x21] sm:$0xff]  ;;  %v4089_v11 = vld [vmem:[#allocation2 + $0x98] sm:$0xff]  ;;  %v4141_v40 = vld [vmem:[#allocation2 + $0xb0] sm:$0xff] }
  0x63   : > { %2989 = vmatprep.subr.bf16.mxu0 %v4971_v54  ;;  %v997_v28 = vld [vmem:[%s4968_s1 + $0x2c0] sm:$0xff]  ;;  %v998_v29 = vld [vmem:[%s4968_s1 + $0x2c8] sm:$0xff] }
  0x64   : > { %v3044_v39 = vpack.c.bf16 %v998_v29, %v997_v28  ;;  %v1003_v28 = vld [vmem:[%s4968_s1 + $0x2f0] sm:$0xff]  ;;  %v1004_v29 = vld [vmem:[%s4968_s1 + $0x2f8] sm:$0xff] }
  0x65   : > { %2943 = vmatpush1.bf16.msra.mxu1 %v2942_v58  ;;  %v980_v58 = vld [vmem:[%s4968_s1 + $0x238] sm:$0xff] }
  0x66   : > { %2991 = vmatpush1.bf16.msra.mxu0 %v2990_v59  ;;  %2944 = vmatprep.subr.bf16.mxu1 %v4971_v54  ;;  %v1011_v59 = vld [vmem:[%s4968_s1 + $0x330] sm:$0xff] }
  0x67   : > { %2992 = vmatprep.subr.bf16.mxu0 %v4971_v54 }
  0x69   : > { %2946 = vmatpush1.bf16.msra.mxu1 %v2945_v0  ;;  %v3927_v0 = vpack.c.bf16 %v1012_v60, %v1011_v59  ;;  %v4061_v59 = vld [vmem:[#allocation2 + $0x79] sm:$0xff] }
  0x6a   : > { %2994 = vmatpush1.bf16.msra.mxu0 %v2993_v1  ;;  %2947 = vmatprep.subr.bf16.mxu1 %v4971_v54  ;;  %v981_v1 = vld [vmem:[%s4968_s1 + $0x240] sm:$0xff] }
  0x6b   : > { %2995 = vmatprep.subr.bf16.mxu0 %v4971_v54 }
  0x6d   : > { %2949 = vmatpush1.bf16.msra.mxu1 %v2948_v6  ;;  %v3946_v6 = vld [vmem:[#allocation2 + $0x39] sm:$0xff] }
  0x6e   : > { %2997 = vmatpush1.bf16.msra.mxu0 %v2996_v7  ;;  %2950 = vmatprep.subr.bf16.mxu1 %v4971_v54  ;;  %v3020_v7 = vpack.c.bf16 %v982_v2, %v981_v1  ;;  %v993_v1 = vld [vmem:[%s4968_s1 + $0x2a0] sm:$0xff]  ;;  %v994_v2 = vld [vmem:[%s4968_s1 + $0x2a8] sm:$0xff] }
  0x6f   : > { %2998 = vmatprep.subr.bf16.mxu0 %v4971_v54  ;;  %v3038_v10 = vpack.c.bf16 %v994_v2, %v993_v1  ;;  %v1001_v2 = vld [vmem:[%s4968_s1 + $0x2e0] sm:$0xff] }
  0x71   : > { %2952 = vmatpush1.bf16.msra.mxu1 %v2951_v12  ;;  %v1015_v12 = vld [vmem:[%s4968_s1 + $0x350] sm:$0xff] }
  0x72   : > { %3000 = vmatpush1.bf16.msra.mxu0 %v2999_v13  ;;  %2953 = vmatprep.subr.bf16.mxu1 %v4971_v54  ;;  %v1016_v13 = vld [vmem:[%s4968_s1 + $0x358] sm:$0xff] }
  0x73   : > { %3001 = vmatprep.subr.bf16.mxu0 %v4971_v54 }
  0x75   : > { %2955 = vmatpush1.bf16.msra.mxu1 %v2954_v18  ;;  %v3973_v18 = vpack.c.bf16 %v1016_v13, %v1015_v12  ;;  %v4093_v12 = vpack.c.bf16 %v1026_v4, %v1025_v3  ;;  %v995_v13 = vld [vmem:[%s4968_s1 + $0x2b0] sm:$0xff]  ;;  %v1002_v3 = vld [vmem:[%s4968_s1 + $0x2e8] sm:$0xff]  ;;  %v1033_v4 = vld [vmem:[%s4968_s1 + $0x3e0] sm:$0xff] }
  0x76   : > { %3003 = vmatpush1.bf16.msra.mxu0 %v3002_v19  ;;  %2956 = vmatprep.subr.bf16.mxu1 %v4971_v54  ;;  %v985_v19 = vld [vmem:[%s4968_s1 + $0x260] sm:$0xff] }
  0x77   : > { %3004 = vmatprep.subr.bf16.mxu0 %v4971_v54  ;;  %5032 = vst [vmem:[#allocation10_spill] sm:$0xff] %v4093_v12 }
  0x79   : > { %2958 = vmatpush1.bf16.msra.mxu1 %v2957_v24  ;;  %v3992_v24 = vld [vmem:[#allocation2 + $0x51] sm:$0xff] }
  0x7a   : > { %3006 = vmatpush1.bf16.msra.mxu0 %v3005_v25  ;;  %3135 = vmatprep.subr.bf16.mxu1 %v4971_v54  ;;  %v3026_v25 = vpack.c.bf16 %v986_v20, %v985_v19  ;;  %v1028_v19 = vld [vmem:[%s4968_s1 + $0x3b8] sm:$0xff]  ;;  %v4111_v20 = vld [vmem:[#allocation2 + $0x82] sm:$0xff] }
  0x7b   : > { %3007 = vmatprep.subr.bf16.mxu0 %v4971_v54 }
  0x7c   : > { %1125 = vmatmul.mubr.f32.vlgmr.msra.gmra.mrb[0].mxu1 %v619_v30  ;;  %v1019_v30 = vld [vmem:[%s4968_s1 + $0x370] sm:$0xff] }
  0x7d   : > { %1350 = vmatmul.mubr.f32.vlgmr.msra.gmra.mrb[0].mxu0 %v683_v33  ;;  %3151 = vmatpush1.bf16.msra.mxu1 %v3861_v31  ;;  %v1020_v33 = vld [vmem:[%s4968_s1 + $0x378] sm:$0xff] }
  0x7e   : > { %3009 = vmatpush1.bf16.msra.mxu0 %v3008_v34  ;;  %1129 = vmatprep.mubr.f32.mxu1 %v652_v35  ;;  %v4013_v34 = vld [vmem:[#allocation2 + $0x52] sm:$0xff]  ;;  %v4015_v35 = vld [vmem:[#allocation2 + $0x61] sm:$0xff] }
  0x7f   : > { %1354 = vmatprep.mubr.f32.mxu0 %v2583_v38  ;;  %3010 = vmatprep.subr.bf16.mxu0 %v4971_v54 }
  0x80   : > { %1130 = vmatmul.mubr.f32.gmra.mrb[2].mxu1 %v620_v41  ;;  %3136 = vmatprep.subr.bf16.mxu1 %v4971_v54  ;;  %v1021_v41 = vld [vmem:[%s4968_s1 + $0x380] sm:$0xff] }
  0x81   : > { %1355 = vmatmul.mubr.f32.gmra.mrb[2].mxu0 %v684_v42  ;;  %1134 = vmatprep.mubr.f32.mxu1 %v3878_v43  ;;  %v1022_v42 = vld [vmem:[%s4968_s1 + $0x388] sm:$0xff] }
  0x82   : > { %1359 = vmatprep.mubr.f32.mxu0 %v2584_v45  ;;  %3012 = vmatpush1.bf16.msra.mxu0 %v3011_v44  ;;  %v4036_v44 = vld [vmem:[#allocation2 + $0x62] sm:$0xff]  ;;  %v4042_v49 = vpack.c.bf16 %v1022_v42, %v1021_v41  ;;  %v999_v42 = vld [vmem:[%s4968_s1 + $0x2d0] sm:$0xff] }
  0x83   : > { %3152 = vmatpush1.bf16.msra.mxu1 %v3881_v46  ;;  %3013 = vmatprep.subr.bf16.mxu0 %v4971_v54 }
  0x84   : > { %1135 = vmatmul.mubr.f32.gmra.mrb[4].mxu1 %v3718_v32  ;;  %3137 = vmatprep.subr.bf16.mxu1 %v4971_v54  ;;  %v3017_v32 = vpack.c.bf16 %v980_v58, %v979_v57  ;;  %v1024_v57 = vld [vmem:[%s4968_s1 + $0x398] sm:$0xff]  ;;  %v4059_v58 = vld [vmem:[#allocation2 + $0x6a] sm:$0xff] }
  0x85   : > { %1360 = vmatmul.mubr.f32.gmra.mrb[4].mxu0 %v3897_v51  ;;  %1139 = vmatprep.mubr.f32.mxu1 %v3899_v52 }
  0x86   : > { %1364 = vmatprep.mubr.f32.mxu0 %v2585_v55  ;;  %3015 = vmatpush1.bf16.msra.mxu0 %v3014_v53  ;;  %v992_v53 = vld [vmem:[%s4968_s1 + $0x298] sm:$0xff] }
  0x87   : > { %3153 = vmatpush1.bf16.msra.mxu1 %v3903_v56  ;;  %3016 = vmatprep.subr.bf16.mxu0 %v4971_v54  ;;  %v3035_v60 = vpack.c.bf16 %v992_v53, %v991_v50  ;;  %v1032_v50 = vld [vmem:[%s4968_s1 + $0x3d8] sm:$0xff] }
  0x88   : > { %1140 = vmatmul.mubr.f32.gmra.mrb[6].mxu1 %v2583_v38  ;;  %3138 = vmatprep.subr.bf16.mxu1 %v4971_v54  ;;  %v4019_v38 = vpack.c.bf16 %v1020_v33, %v1019_v30  ;;  %v1029_v30 = vld [vmem:[%s4968_s1 + $0x3c0] sm:$0xff]  ;;  %v1030_v33 = vld [vmem:[%s4968_s1 + $0x3c8] sm:$0xff] }
  0x89   : > { %1365 = vmatmul.mubr.f32.gmra.mrb[6].mxu0 %v3921_v61  ;;  %1144 = vmatprep.mubr.f32.mxu1 %v3923_v62  ;;  %v4145_v41 = vpack.c.bf16 %v1030_v33, %v1029_v30  ;;  %v4164_v53 = vld [vmem:[#allocation2 + $0x9a] sm:$0xff]  ;;  %v1035_v30 = vld [vmem:[%s4968_s1 + $0x3f0] sm:$0xff] }
  0x8a   : > { %1369 = vmatprep.mubr.f32.mxu0 %v2586_v63  ;;  %3018 = vmatpush1.bf16.msra.mxu0 %v3017_v32  ;;  %v4063_v32 = vld [vmem:[#allocation2 + $0x90] sm:$0xff]  ;;  %5035 = vst [vmem:[#allocation13_spill] sm:$0xff] %v4164_v53  ;;  %v1036_v33 = vld [vmem:[%s4968_s1 + $0x3f8] sm:$0xff] }
  0x8b   : > { %3154 = vmatpush1.bf16.msra.mxu1 %v3927_v0  ;;  %3019 = vmatprep.subr.bf16.mxu0 %v4971_v54  ;;  %5034 = vst [vmem:[#allocation12_spill] sm:$0xff] %v4145_v41 }
  0x8c   : > { %1145 = vmatmul.mubr.f32.gmra.mrb[8].mxu1 %v2584_v45  ;;  %3139 = vmatprep.subr.bf16.mxu1 %v4971_v54  ;;  %v4038_v45 = vld [vmem:[#allocation2 + $0x69] sm:$0xff] }
  0x8d   : > { %1370 = vmatmul.mubr.f32.gmra.mrb[8].mxu0 %v3944_v5  ;;  %1149 = vmatprep.mubr.f32.mxu1 %v3946_v6 }
  0x8e   : > { %1374 = vmatprep.mubr.f32.mxu0 %v2587_v8  ;;  %3021 = vmatpush1.bf16.msra.mxu0 %v3020_v7  ;;  %v4085_v7 = vld [vmem:[#allocation2 + $0x7a] sm:$0xff] }
  0x8f   : > { %3155 = vmatpush1.bf16.msra.mxu1 %v3950_v9  ;;  %3022 = vmatprep.subr.bf16.mxu0 %v4971_v54 }
  0x90   : > { %1150 = vmatmul.mubr.f32.gmra.mrb[10].mxu1 %v2585_v55  ;;  %3140 = vmatprep.subr.bf16.mxu1 %v4971_v54  ;;  %v1023_v55 = vld [vmem:[%s4968_s1 + $0x390] sm:$0xff] }
  0x91   : > { %1375 = vmatmul.mubr.f32.gmra.mrb[10].mxu0 %v3967_v14  ;;  %1154 = vmatprep.mubr.f32.mxu1 %v3969_v15 }
  0x92   : > { %1379 = vmatprep.mubr.f32.mxu0 %v2588_v17  ;;  %3024 = vmatpush1.bf16.msra.mxu0 %v3023_v16  ;;  %v996_v16 = vld [vmem:[%s4968_s1 + $0x2b8] sm:$0xff] }
  0x93   : > { %3156 = vmatpush1.bf16.msra.mxu1 %v3973_v18  ;;  %3025 = vmatprep.subr.bf16.mxu0 %v4971_v54  ;;  %v3041_v22 = vpack.c.bf16 %v996_v16, %v995_v13  ;;  %v4191_v13 = vld [vmem:[#allocation2 + $0xaa] sm:$0xff] }
  0x94   : > { %1155 = vmatmul.mubr.f32.gmra.mrb[12].mxu1 %v2586_v63  ;;  %3141 = vmatprep.subr.bf16.mxu1 %v4971_v54  ;;  %v4067_v63 = vpack.c.bf16 %v1024_v57, %v1023_v55  ;;  %v4166_v55 = vld [vmem:[#allocation2 + $0xa9] sm:$0xff]  ;;  %5037 = vst [vmem:[#allocation15_spill] sm:$0xff] %v4191_v13  ;;  %v4193_v16 = vld [vmem:[#allocation2 + $0xb1] sm:$0xff] }
  0x95   : > { %1380 = vmatmul.mubr.f32.gmra.mrb[12].mxu0 %v3990_v23  ;;  %1159 = vmatprep.mubr.f32.mxu1 %v3992_v24 }
  0x96   : > { %1384 = vmatprep.mubr.f32.mxu0 %v2589_v26  ;;  %3027 = vmatpush1.bf16.msra.mxu0 %v3026_v25  ;;  %v4115_v25 = vld [vmem:[#allocation2 + $0xa8] sm:$0xff] }
  0x97   : > { %3157 = vmatpush1.bf16.msra.mxu1 %v3996_v27  ;;  %3028 = vmatprep.subr.bf16.mxu0 %v4971_v54 }
  0x98   : > { %1160 = vmatmul.mubr.f32.gmra.mrb[14].mxu1 %v2587_v8  ;;  %3142 = vmatprep.subr.bf16.mxu1 %v4971_v54  ;;  %v4087_v8 = vld [vmem:[#allocation2 + $0x81] sm:$0xff] }
  0x99   : > { %1385 = vmatmul.mubr.f32.gmra.mrb[14].mxu0 %v4013_v34  ;;  %1164 = vmatprep.mubr.f32.mxu1 %v4015_v35 }
  0x9a   : > { %1389 = vmatprep.mubr.f32.mxu0 %v2590_v37  ;;  %3030 = vmatpush1.bf16.msra.mxu0 %v3029_v36  ;;  %v4137_v36 = vld [vmem:[#allocation2 + $0x92] sm:$0xff] }
  0x9b   : > { %3158 = vmatpush1.bf16.msra.mxu1 %v4019_v38  ;;  %3031 = vmatprep.subr.bf16.mxu0 %v4971_v54 }
  0x9c   : > { %1165 = vmatmul.mubr.f32.gmra.mrb[16].mxu1 %v2588_v17  ;;  %3143 = vmatprep.subr.bf16.mxu1 %v4971_v54  ;;  %v1027_v17 = vld [vmem:[%s4968_s1 + $0x3b0] sm:$0xff] }
  0x9d   : > { %1390 = vmatmul.mubr.f32.gmra.mrb[16].mxu0 %v4036_v44  ;;  %1169 = vmatprep.mubr.f32.mxu1 %v4038_v45 }
  0x9e   : > { %1394 = vmatprep.mubr.f32.mxu0 %v2591_v48  ;;  %3033 = vmatpush1.bf16.msra.mxu0 %v3032_v47  ;;  %v1000_v47 = vld [vmem:[%s4968_s1 + $0x2d8] sm:$0xff] }
  0x9f   : > { %3159 = vmatpush1.bf16.msra.mxu1 %v4042_v49  ;;  %3034 = vmatprep.subr.bf16.mxu0 %v4971_v54  ;;  %v3047_v57 = vpack.c.bf16 %v1000_v47, %v999_v42  ;;  %v1038_v42 = vld [vmem:[%s4968_s1 + $0x408] sm:$0xff]  ;;  %v4224_v47 = vld [vmem:[#allocation2 + $0xb2] sm:$0xff] }
  0xa0   : > { %1170 = vmatmul.mubr.f32.gmra.mrb[18].mxu1 %v2589_v26  ;;  %3144 = vmatprep.subr.bf16.mxu1 %v4971_v54  ;;  %v4119_v26 = vpack.c.bf16 %v1028_v19, %v1027_v17  ;;  %v3050_v17 = vpack.c.bf16 %v1002_v3, %v1001_v2  ;;  %v4195_v19 = vld [vmem:[#allocation2 + $0xc8] sm:$0xff]  ;;  %5039 = vst [vmem:[#allocation17_spill] sm:$0xff] %v4224_v47 }
  0xa1   : > { %1395 = vmatmul.mubr.f32.gmra.mrb[18].mxu0 %v4059_v58  ;;  %1174 = vmatprep.mubr.f32.mxu1 %v4061_v59  ;;  %v4232_v2 = vpack.c.bf16 %v1036_v33, %v1035_v30  ;;  %v4258_v30 = vld [vmem:[#allocation2 + $0xf0] sm:$0xff]  ;;  %v4264_v33 = vld [vmem:[#allocation2 + $0xda] sm:$0xff] }
  0xa2   : > { %1399 = vmatprep.mubr.f32.mxu0 %v4063_v32  ;;  %3036 = vmatpush1.bf16.msra.mxu0 %v3035_v60  ;;  %5033 = vst [vmem:[#allocation11_spill] sm:$0xff] %v4119_v26  ;;  %v4168_v60 = vld [vmem:[#allocation2 + $0xc0] sm:$0xff]  ;;  %5043 = vst [vmem:[#allocation21_spill] sm:$0xff] %v4264_v33 }
  0xa3   : > { %3160 = vmatpush1.bf16.msra.mxu1 %v4067_v63  ;;  %3037 = vmatprep.subr.bf16.mxu0 %v4971_v54  ;;  %5040 = vst [vmem:[#allocation18_spill] sm:$0xff] %v4232_v2 }
  0xa4   : > { %1175 = vmatmul.mubr.f32.gmra.mrb[20].mxu1 %v2590_v37  ;;  %3145 = vmatprep.subr.bf16.mxu1 %v4971_v54  ;;  %v4139_v37 = vld [vmem:[#allocation2 + $0x99] sm:$0xff] }
  0xa5   : > { %1400 = vmatmul.mubr.f32.gmra.mrb[20].mxu0 %v4085_v7  ;;  %1179 = vmatprep.mubr.f32.mxu1 %v4087_v8 }
  0xa6   : > { %1404 = vmatprep.mubr.f32.mxu0 %v4089_v11  ;;  %3039 = vmatpush1.bf16.msra.mxu0 %v3038_v10  ;;  %v1034_v10 = vld [vmem:[%s4968_s1 + $0x3e8] sm:$0xff] }
  0xa7   : > { %3161 = vmatpush1.bf16.msra.mxu1 %v4093_v12  ;;  %3040 = vmatprep.subr.bf16.mxu0 %v4971_v54  ;;  %v4324_v12 = vld [vmem:[#allocation2 + $0x122] sm:$0xff] }
  0xa8   : > { %1180 = vmatmul.mubr.f32.gmra.mrb[22].mxu1 %v2591_v48  ;;  %3146 = vmatprep.subr.bf16.mxu1 %v4971_v54  ;;  %v1031_v48 = vld [vmem:[%s4968_s1 + $0x3d0] sm:$0xff]  ;;  %5054 = vst [vmem:[#allocation32_spill] sm:$0xff] %v4324_v12 }
  0xa9   : > { %1405 = vmatmul.mubr.f32.gmra.mrb[22].mxu0 %v4111_v20  ;;  %1184 = vmatprep.mubr.f32.mxu1 %v4113_v21  ;;  %v4172_v1 = vpack.c.bf16 %v1032_v50, %v1031_v48  ;;  %v4226_v48 = vld [vmem:[#allocation2 + $0xc1] sm:$0xff]  ;;  %v3053_v50 = vpack.c.bf16 %v1004_v29, %v1003_v28  ;;  %v4254_v28 = vld [vmem:[#allocation2 + $0xca] sm:$0xff]  ;;  %v4256_v29 = vld [vmem:[#allocation2 + $0xd9] sm:$0xff] }
  0xaa   : > { %1409 = vmatprep.mubr.f32.mxu0 %v4115_v25  ;;  %3042 = vmatpush1.bf16.msra.mxu0 %v3041_v22  ;;  %v4199_v22 = vpack.c.bf16 %v1034_v10, %v1033_v4  ;;  %v4241_v4 = vld [vmem:[#allocation2 + $0xc2] sm:$0xff]  ;;  %5042 = vst [vmem:[#allocation20_spill] sm:$0xff] %v4254_v28 }
  0xab   : > { %3162 = vmatpush1.bf16.msra.mxu1 %v4119_v26  ;;  %3043 = vmatprep.subr.bf16.mxu0 %v4971_v54  ;;  %5036 = vst [vmem:[#allocation14_spill] sm:$0xff] %v4172_v1  ;;  %5041 = vst [vmem:[#allocation19_spill] sm:$0xff] %v4241_v4  ;;  %v4243_v10 = vld [vmem:[#allocation2 + $0xc9] sm:$0xff]  ;;  %v4314_v26 = vld [vmem:[#allocation2 + $0x112] sm:$0xff] }
  0xac   : > { %1185 = vmatmul.mubr.f32.gmra.mrb[24].mxu1 %v4063_v32  ;;  %3147 = vmatprep.subr.bf16.mxu1 %v4971_v54  ;;  %5038 = vst [vmem:[#allocation16_spill] sm:$0xff] %v4199_v22  ;;  %5051 = vst [vmem:[#allocation29_spill] sm:$0xff] %v4314_v26 }
  0xad   : > { %1410 = vmatmul.mubr.f32.gmra.mrb[24].mxu0 %v4137_v36  ;;  %1189 = vmatprep.mubr.f32.mxu1 %v4139_v37 }
  0xae   : > { %1414 = vmatprep.mubr.f32.mxu0 %v4141_v40  ;;  %3045 = vmatpush1.bf16.msra.mxu0 %v3044_v39  ;;  %v1037_v39 = vld [vmem:[%s4968_s1 + $0x400] sm:$0xff] }
  0xaf   : > { %3163 = vmatpush1.bf16.msra.mxu1 %v4145_v41  ;;  %3046 = vmatprep.subr.bf16.mxu0 %v4971_v54  ;;  %v4236_v3 = vpack.c.bf16 %v1038_v42, %v1037_v39  ;;  %v4266_v39 = vld [vmem:[#allocation2 + $0xe1] sm:$0xff]  ;;  %v4268_v42 = vld [vmem:[#allocation2 + $0xf8] sm:$0xff]  ;;  %v4304_v41 = vld [vmem:[#allocation2 + $0x10a] sm:$0xff] }
  0xb0   : > { %1190 = vmatmul.mubr.f32.gmra.mrb[26].mxu1 %v4089_v11  ;;  %3148 = vmatprep.subr.bf16.mxu1 %v4971_v54  ;;  %5049 = vst [vmem:[#allocation27_spill] sm:$0xff] %v4304_v41 }
  0xb1   : > { %1415 = vmatmul.mubr.f32.gmra.mrb[26].mxu0 %v4164_v53  ;;  %1194 = vmatprep.mubr.f32.mxu1 %v4166_v55  ;;  %v4328_v53 = vld [vmem:[#allocation2 + $0x140] sm:$0xff] }
  0xb2   : > { %1419 = vmatprep.mubr.f32.mxu0 %v4168_v60  ;;  %3048 = vmatpush1.bf16.msra.mxu0 %v3047_v57  ;;  %v4228_v57 = vld [vmem:[#allocation2 + $0xd8] sm:$0xff]  ;;  %5056 = vst [vmem:[#allocation34_spill] sm:$0xff] %v4328_v53 }
  0xb3   : > { %3164 = vmatpush1.bf16.msra.mxu1 %v4172_v1  ;;  %3049 = vmatprep.subr.bf16.mxu0 %v4971_v54  ;;  %v4294_v1 = vld [vmem:[#allocation2 + $0xfa] sm:$0xff] }
  0xb4   : > { %1195 = vmatmul.mubr.f32.gmra.mrb[28].mxu1 %v4115_v25  ;;  %3149 = vmatprep.subr.bf16.mxu1 %v4971_v54  ;;  %5047 = vst [vmem:[#allocation25_spill] sm:$0xff] %v4294_v1 }
  0xb5   : > { %1420 = vmatmul.mubr.f32.gmra.mrb[28].mxu0 %v4191_v13  ;;  %1199 = vmatprep.mubr.f32.mxu1 %v4193_v16  ;;  %v4318_v13 = vld [vmem:[#allocation2 + $0x138] sm:$0xff] }
  0xb6   : > { %1424 = vmatprep.mubr.f32.mxu0 %v4195_v19  ;;  %3051 = vmatpush1.bf16.msra.mxu0 %v3050_v17  ;;  %v4245_v17 = vld [vmem:[#allocation2 + $0xe0] sm:$0xff]  ;;  %5053 = vst [vmem:[#allocation31_spill] sm:$0xff] %v4318_v13 }
  0xb7   : > { %3165 = vmatpush1.bf16.msra.mxu1 %v4199_v22  ;;  %3052 = vmatprep.subr.bf16.mxu0 %v4971_v54  ;;  %v4284_v22 = vld [vmem:[#allocation2 + $0xf2] sm:$0xff] }
  0xb8   : > { %1200 = vmatmul.mubr.f32.gmra.mrb[30].mxu1 %v4141_v40  ;;  %3150 = vmatprep.subr.bf16.mxu1 %v4971_v54  ;;  %5045 = vst [vmem:[#allocation23_spill] sm:$0xff] %v4284_v22 }
  0xb9   : > { %1425 = vmatmul.mubr.f32.gmra.mrb[30].mxu0 %v4224_v47  ;;  %1204 = vmatprep.mubr.f32.mxu1 %v4226_v48  ;;  %v4308_v47 = vld [vmem:[#allocation2 + $0x128] sm:$0xff] }
  0xba   : > { %1429 = vmatprep.mubr.f32.mxu0 %v4228_v57  ;;  %3054 = vmatpush1.bf16.msra.mxu0 %v3053_v50  ;;  %v4274_v50 = vld [vmem:[#allocation2 + $0xe2] sm:$0xff]  ;;  %5050 = vst [vmem:[#allocation28_spill] sm:$0xff] %v4308_v47 }
  0xbb   : > { %3166 = vmatpush1.bf16.msra.mxu1 %v4232_v2  ;;  %3055 = vmatprep.subr.bf16.mxu0 %v4971_v54  ;;  %5044 = vst [vmem:[#allocation22_spill] sm:$0xff] %v4274_v50  ;;  %v4276_v54 = vld [vmem:[#allocation2 + $0xf1] sm:$0xff]  ;;  %v4278_v2 = vld [vmem:[#allocation2 + $0x108] sm:$0xff] }
  0xbc   : > { %1205 = vmatmul.mubr.f32.gmra.mrb[32].mxu1 %v4168_v60  ;;  %3104 = vmatprep.subr.bf16.mxu1 %v4236_v3 }
  0xbd   : > { %1430 = vmatmul.mubr.f32.gmra.mrb[32].mxu0 %v4241_v4  ;;  %1209 = vmatprep.mubr.f32.mxu1 %v4243_v10  ;;  %v4298_v4 = vld [vmem:[#allocation2 + $0x120] sm:$0xff] }
  0xbe   : > { %1434 = vmatprep.mubr.f32.mxu0 %v4245_v17  ;;  %5048 = vst [vmem:[#allocation26_spill] sm:$0xff] %v4298_v4 }
  0xc0   : > { %1210 = vmatmul.mubr.f32.gmra.mrb[34].mxu1 %v4195_v19 }
  0xc1   : > { %1435 = vmatmul.mubr.f32.gmra.mrb[34].mxu0 %v4254_v28  ;;  %1214 = vmatprep.mubr.f32.mxu1 %v4256_v29  ;;  %v4288_v28 = vld [vmem:[#allocation2 + $0x110] sm:$0xff] }
  0xc2   : > { %1439 = vmatprep.mubr.f32.mxu0 %v4258_v30  ;;  %5046 = vst [vmem:[#allocation24_spill] sm:$0xff] %v4288_v28 }
  0xc4   : > { %1215 = vmatmul.mubr.f32.gmra.mrb[36].mxu1 %v4228_v57 }
  0xc5   : > { %1440 = vmatmul.mubr.f32.gmra.mrb[36].mxu0 %v4264_v33  ;;  %1219 = vmatprep.mubr.f32.mxu1 %v4266_v39  ;;  %v4286_v33 = vld [vmem:[#allocation2 + $0xf9] sm:$0xff] }
  0xc6   : > { %1444 = vmatprep.mubr.f32.mxu0 %v4268_v42 }
  0xc8   : > { %1220 = vmatmul.mubr.f32.gmra.mrb[38].mxu1 %v4245_v17 }
  0xc9   : > { %1445 = vmatmul.mubr.f32.gmra.mrb[38].mxu0 %v4274_v50  ;;  %1224 = vmatprep.mubr.f32.mxu1 %v4276_v54  ;;  %v4296_v50 = vld [vmem:[#allocation2 + $0x109] sm:$0xff] }
  0xca   : > { %1449 = vmatprep.mubr.f32.mxu0 %v4278_v2 }
  0xcc   : > { %1225 = vmatmul.mubr.f32.gmra.mrb[40].mxu1 %v4258_v30 }
  0xcd   : > { %1450 = vmatmul.mubr.f32.gmra.mrb[40].mxu0 %v4284_v22  ;;  %1229 = vmatprep.mubr.f32.mxu1 %v4286_v33  ;;  %v4306_v22 = vld [vmem:[#allocation2 + $0x111] sm:$0xff] }
  0xce   : > { %1454 = vmatprep.mubr.f32.mxu0 %v4288_v28 }
  0xd0   : > { %1230 = vmatmul.mubr.f32.gmra.mrb[42].mxu1 %v4268_v42 }
  0xd1   : > { %1455 = vmatmul.mubr.f32.gmra.mrb[42].mxu0 %v4294_v1  ;;  %1234 = vmatprep.mubr.f32.mxu1 %v4296_v50  ;;  %v4316_v1 = vld [vmem:[#allocation2 + $0x121] sm:$0xff] }
  0xd2   : > { %1459 = vmatprep.mubr.f32.mxu0 %v4298_v4  ;;  %5052 = vst [vmem:[#allocation30_spill] sm:$0xff] %v4316_v1 }
  0xd4   : > { %1235 = vmatmul.mubr.f32.gmra.mrb[44].mxu1 %v4278_v2 }
  0xd5   : > { %1460 = vmatmul.mubr.f32.gmra.mrb[44].mxu0 %v4304_v41  ;;  %1239 = vmatprep.mubr.f32.mxu1 %v4306_v22  ;;  %v4326_v41 = vld [vmem:[#allocation2 + $0x129] sm:$0xff] }
  0xd6   : > { %1464 = vmatprep.mubr.f32.mxu0 %v4308_v47  ;;  %5055 = vst [vmem:[#allocation33_spill] sm:$0xff] %v4326_v41 }
  0xd8   : > { %1240 = vmatmul.mubr.f32.gmra.mrb[46].mxu1 %v4288_v28  ;;  %v4334_v28 = vld [vmem:[#allocation2 + $0x12a] sm:$0xff] }
  0xd9   : > { %1465 = vmatmul.mubr.f32.gmra.mrb[46].mxu0 %v4314_v26  ;;  %1244 = vmatprep.mubr.f32.mxu1 %v4316_v1  ;;  %5057 = vst [vmem:[#allocation35_spill] sm:$0xff] %v4334_v28  ;;  %v4336_v26 = vld [vmem:[#allocation2 + $0x139] sm:$0xff]  ;;  %v4338_v1 = vld [vmem:[#allocation2 + $0x150] sm:$0xff] }
  0xda   : > { %1469 = vmatprep.mubr.f32.mxu0 %v4318_v13  ;;  %5058 = vst [vmem:[#allocation36_spill] sm:$0xff] %v4336_v26  ;;  %5059 = vst [vmem:[#allocation37_spill] sm:$0xff] %v4338_v1 }
  0xdc   : > { %1245 = vmatmul.mubr.f32.gmra.mrb[48].mxu1 %v4298_v4  ;;  %v4344_v4 = vld [vmem:[#allocation2 + $0x13a] sm:$0xff] }
  0xdd   : > { %1470 = vmatmul.mubr.f32.gmra.mrb[48].mxu0 %v4324_v12  ;;  %1249 = vmatprep.mubr.f32.mxu1 %v4326_v41  ;;  %5060 = vst [vmem:[#allocation38_spill] sm:$0xff] %v4344_v4  ;;  %v4346_v12 = vld [vmem:[#allocation2 + $0x141] sm:$0xff]  ;;  %v4348_v41 = vld [vmem:[#allocation2 + $0x158] sm:$0xff] }
  0xde   : > { %1474 = vmatprep.mubr.f32.mxu0 %v4328_v53  ;;  %5061 = vst [vmem:[#allocation39_spill] sm:$0xff] %v4346_v12  ;;  %5062 = vst [vmem:[#allocation40_spill] sm:$0xff] %v4348_v41 }
  0xe0   : > { %1250 = vmatmul.mubr.f32.gmra.mrb[50].mxu1 %v4308_v47  ;;  %v4354_v47 = vld [vmem:[#allocation2 + $0x142] sm:$0xff] }
  0xe1   : > { %1475 = vmatmul.mubr.f32.gmra.mrb[50].mxu0 %v4334_v28  ;;  %1254 = vmatprep.mubr.f32.mxu1 %v4336_v26  ;;  %5063 = vst [vmem:[#allocation41_spill] sm:$0xff] %v4354_v47  ;;  %v4356_v28 = vld [vmem:[#allocation2 + $0x151] sm:$0xff]  ;;  %v4358_v26 = vld [vmem:[#allocation2 + $0x168] sm:$0xff] }
  0xe2   : > { %1479 = vmatprep.mubr.f32.mxu0 %v4338_v1  ;;  %5064 = vst [vmem:[#allocation42_spill] sm:$0xff] %v4356_v28 }
  0xe4   : > { %1255 = vmatmul.mubr.f32.gmra.mrb[52].mxu1 %v4318_v13  ;;  %v4364_v13 = vld [vmem:[#allocation2 + $0x152] sm:$0xff] }
  0xe5   : > { %1480 = vmatmul.mubr.f32.gmra.mrb[52].mxu0 %v4344_v4  ;;  %1259 = vmatprep.mubr.f32.mxu1 %v4346_v12  ;;  %5065 = vst [vmem:[#allocation43_spill] sm:$0xff] %v4364_v13  ;;  %v4366_v4 = vld [vmem:[#allocation2 + $0x159] sm:$0xff]  ;;  %v4368_v12 = vld [vmem:[#allocation2 + $0x170] sm:$0xff] }
  0xe6   : > { %1484 = vmatprep.mubr.f32.mxu0 %v4348_v41  ;;  %5066 = vst [vmem:[#allocation44_spill] sm:$0xff] %v4366_v4 }
  0xe8   : > { %1260 = vmatmul.mubr.f32.gmra.mrb[54].mxu1 %v4328_v53  ;;  %v4374_v53 = vld [vmem:[#allocation2 + $0x15a] sm:$0xff] }
  0xe9   : > { %1485 = vmatmul.mubr.f32.gmra.mrb[54].mxu0 %v4354_v47  ;;  %1264 = vmatprep.mubr.f32.mxu1 %v4356_v28  ;;  %5067 = vst [vmem:[#allocation45_spill] sm:$0xff] %v4374_v53  ;;  %v4376_v47 = vld [vmem:[#allocation2 + $0x169] sm:$0xff]  ;;  %v4378_v28 = vld [vmem:[#allocation2 + $0x180] sm:$0xff] }
  0xea   : > { %1489 = vmatprep.mubr.f32.mxu0 %v4358_v26  ;;  %5068 = vst [vmem:[#allocation46_spill] sm:$0xff] %v4378_v28 }
  0xec   : > { %1265 = vmatmul.mubr.f32.gmra.mrb[56].mxu1 %v4338_v1  ;;  %v4384_v1 = vld [vmem:[#allocation2 + $0x16a] sm:$0xff] }
  0xed   : > { %1490 = vmatmul.mubr.f32.gmra.mrb[56].mxu0 %v4364_v13  ;;  %1269 = vmatprep.mubr.f32.mxu1 %v4366_v4  ;;  %5069 = vst [vmem:[#allocation47_spill] sm:$0xff] %v4384_v1  ;;  %v4386_v13 = vld [vmem:[#allocation2 + $0x171] sm:$0xff]  ;;  %v4388_v4 = vld [vmem:[#allocation2 + $0x188] sm:$0xff] }
  0xee   : > { %1494 = vmatprep.mubr.f32.mxu0 %v4368_v12  ;;  %5070 = vst [vmem:[#allocation48_spill] sm:$0xff] %v4388_v4 }
  0xf0   : > { %1270 = vmatmul.mubr.f32.gmra.mrb[58].mxu1 %v4348_v41  ;;  %v4394_v41 = vld [vmem:[#allocation2 + $0x172] sm:$0xff] }
  0xf1   : > { %1495 = vmatmul.mubr.f32.gmra.mrb[58].mxu0 %v4374_v53  ;;  %1274 = vmatprep.mubr.f32.mxu1 %v4376_v47  ;;  %5071 = vst [vmem:[#allocation49_spill] sm:$0xff] %v4394_v41  ;;  %v1039_v53 = vld [vmem:[%s4968_s1 + $0x410] sm:$0xff] }
  0xf2   : > { %1499 = vmatprep.mubr.f32.mxu0 %v4378_v28  ;;  %v1042_v28 = vld [vmem:[%s4968_s1 + $0x428] sm:$0xff] }
  0xf4   : > { %1275 = vmatmul.mubr.f32.gmra.mrb[60].mxu1 %v4358_v26 }
  0xf5   : > { %1500 = vmatmul.mubr.f32.gmra.mrb[60].mxu0 %v4384_v1  ;;  %1279 = vmatprep.mubr.f32.mxu1 %v4386_v13  ;;  %v1040_v1 = vld [vmem:[%s4968_s1 + $0x418] sm:$0xff] }
  0xf6   : > { %1504 = vmatprep.mubr.f32.mxu0 %v4388_v4  ;;  %v3107_v4 = vpack.c.bf16 %v1040_v1, %v1039_v53  ;;  %v5094_v53 = vld [vmem:[#allocation18_spill] sm:$0xff] }
  0xf7   : > { %v5097_v1 = vld [vmem:[#allocation22_spill] sm:$0xff] }
  0xf8   : > { %1280 = vmatmul.mubr.f32.gmra.mrb[62].mxu1 %v4368_v12 }
  0xf9   : > { %1505 = vmatmul.mubr.f32.gmra.mrb[62].mxu0 %v4394_v41  ;;  %1839 = vmatprep.mubr.f32.mxu1 %v4113_v21  ;;  %v1041_v41 = vld [vmem:[%s4968_s1 + $0x420] sm:$0xff] }
  0xfa   : > { %1574 = vmatprep.mubr.f32.mxu0 %v3897_v51  ;;  %v5072_v51 = vmov 0.0|0.0  }
  0xfc   : > { %1840 = vmatmul.mubr.f32.vlgmr.msra.gmra.mrb[64].mxu1 %v4063_v32  ;;  %v1043_v32 = vld [vmem:[%s4968_s1 + $0x430] sm:$0xff] }
  0xfd   : > { %1575 = vmatmul.mubr.f32.vlgmr.msra.gmra.mrb[0].mxu0 %v3878_v43  ;;  %3106 = vmatpush3.bf16.msra.mxu1 %v4236_v3  ;;  %v3111_v43 = vpack.c.bf16 %v1042_v28, %v1041_v41  ;;  %v5093_v41 = vld [vmem:[#allocation21_spill] sm:$0xff]  ;;  %v4556_v3 = vld [vmem:[#allocation2 + $0x189] sm:$0xff] }
  0xfe   : > { %3057 = vmatpush1.bf16.msra.mxu0 %v3861_v31  ;;  %1579 = vmatprep.mubr.f32.mxu0 %v3921_v61  ;;  %v1044_v31 = vld [vmem:[%s4968_s1 + $0x438] sm:$0xff]  ;;  %v1045_v61 = vld [vmem:[%s4968_s1 + $0x440] sm:$0xff] }
  0xff   : > { %1844 = vmatprep.mubr.f32.mxu1 %v4139_v37  ;;  %3058 = vmatprep.subr.bf16.mxu0 %v5072_v51  ;;  %v2708_v28 = vld [vmem:[#allocation2 + $0x198] sm:$0xff] }
 0x100   : > { %1845 = vmatmul.mubr.f32.gmra.mrb[66].mxu1 %v4089_v11  ;;  %3108 = vmatprep.subr.bf16.mxu1 %v3107_v4  ;;  %v5086_v11 = vld [vmem:[#allocation14_spill] sm:$0xff] }
 0x101   : > { %1580 = vmatmul.mubr.f32.gmra.mrb[2].mxu0 %v3899_v52  ;;  %1849 = vmatprep.mubr.f32.mxu1 %v4166_v55  ;;  %v3115_v52 = vpack.c.bf16 %v1044_v31, %v1043_v32  ;;  %v2743_v32 = vld [vmem:[#allocation2 + $0x3a] sm:$0xff] }
 0x102   : > { %1584 = vmatprep.mubr.f32.mxu0 %v3944_v5  ;;  %3060 = vmatpush1.bf16.msra.mxu0 %v3881_v46  ;;  %v1046_v5 = vld [vmem:[%s4968_s1 + $0x448] sm:$0xff]  ;;  %v5107_v31 = vld [vmem:[#allocation38_spill] sm:$0xff] }
 0x103   : > { %3110 = vmatpush3.bf16.msra.mxu1 %v3107_v4  ;;  %3061 = vmatprep.subr.bf16.mxu0 %v5072_v51  ;;  %v3119_v46 = vpack.c.bf16 %v1046_v5, %v1045_v61  ;;  %v5102_v4 = vld [vmem:[#allocation46_spill] sm:$0xff] }
 0x104   : > { %1850 = vmatmul.mubr.f32.gmra.mrb[68].mxu1 %v4115_v25  ;;  %3112 = vmatprep.subr.bf16.mxu1 %v3111_v43  ;;  %v5089_v25 = vld [vmem:[#allocation20_spill] sm:$0xff] }
 0x105   : > { %1585 = vmatmul.mubr.f32.gmra.mrb[4].mxu0 %v3923_v62  ;;  %1854 = vmatprep.mubr.f32.mxu1 %v4193_v16  ;;  %v1047_v62 = vld [vmem:[%s4968_s1 + $0x450] sm:$0xff] }
 0x106   : > { %1589 = vmatprep.mubr.f32.mxu0 %v3967_v14  ;;  %3063 = vmatpush1.bf16.msra.mxu0 %v3903_v56  ;;  %v1048_v14 = vld [vmem:[%s4968_s1 + $0x458] sm:$0xff] }
 0x107   : > { %3064 = vmatprep.subr.bf16.mxu0 %v5072_v51  ;;  %3114 = vmatpush3.bf16.msra.mxu1 %v3111_v43  ;;  %v3123_v56 = vpack.c.bf16 %v1048_v14, %v1047_v62  ;;  %v5108_v62 = vld [vmem:[#allocation41_spill] sm:$0xff]  ;;  %v2746_v14 = vld [vmem:[#allocation2 + $0x62] sm:$0xff] }
 0x108   : > { %1855 = vmatmul.mubr.f32.gmra.mrb[70].mxu1 %v4141_v40  ;;  %3116 = vmatprep.subr.bf16.mxu1 %v3115_v52  ;;  %v5092_v40 = vld [vmem:[#allocation42_spill] sm:$0xff] }
 0x109   : > { %1590 = vmatmul.mubr.f32.gmra.mrb[6].mxu0 %v3946_v6  ;;  %1859 = vmatprep.mubr.f32.mxu1 %v4226_v48  ;;  %v1049_v6 = vld [vmem:[%s4968_s1 + $0x460] sm:$0xff] }
 0x10a   : > { %1594 = vmatprep.mubr.f32.mxu0 %v3990_v23  ;;  %3066 = vmatpush1.bf16.msra.mxu0 %v3927_v0  ;;  %v1050_v23 = vld [vmem:[%s4968_s1 + $0x468] sm:$0xff] }
 0x10b   : > { %3067 = vmatprep.subr.bf16.mxu0 %v5072_v51  ;;  %3118 = vmatpush3.bf16.msra.mxu1 %v3115_v52  ;;  %v3127_v0 = vpack.c.bf16 %v1050_v23, %v1049_v6  ;;  %v2744_v52 = vld [vmem:[#allocation2 + $0x4a] sm:$0xff] }
 0x10c   : > { %1860 = vmatmul.mubr.f32.gmra.mrb[72].mxu1 %v4168_v60  ;;  %3120 = vmatprep.subr.bf16.mxu1 %v3119_v46  ;;  %v5096_v60 = vld [vmem:[#allocation44_spill] sm:$0xff] }
 0x10d   : > { %1595 = vmatmul.mubr.f32.gmra.mrb[8].mxu0 %v3969_v15  ;;  %1864 = vmatprep.mubr.f32.mxu1 %v4243_v10  ;;  %v1051_v15 = vld [vmem:[%s4968_s1 + $0x470] sm:$0xff] }
 0x10e   : > { %1599 = vmatprep.mubr.f32.mxu0 %v4013_v34  ;;  %3069 = vmatpush1.bf16.msra.mxu0 %v3950_v9  ;;  %v1052_v34 = vld [vmem:[%s4968_s1 + $0x478] sm:$0xff]  ;;  %v2747_v23 = vld [vmem:[#allocation2 + $0x6a] sm:$0xff] }
 0x10f   : > { %3070 = vmatprep.subr.bf16.mxu0 %v5072_v51  ;;  %3122 = vmatpush3.bf16.msra.mxu1 %v3119_v46  ;;  %v3131_v9 = vpack.c.bf16 %v1052_v34, %v1051_v15  ;;  %v2745_v46 = vld [vmem:[#allocation2 + $0x52] sm:$0xff]  ;;  %v2748_v15 = vld [vmem:[#allocation2 + $0x7a] sm:$0xff] }
 0x110   : > { %1865 = vmatmul.mubr.f32.gmra.mrb[74].mxu1 %v4195_v19  ;;  %3124 = vmatprep.subr.bf16.mxu1 %v3123_v56  ;;  %v5099_v19 = vld [vmem:[#allocation23_spill] sm:$0xff] }
 0x111   : > { %1600 = vmatmul.mubr.f32.gmra.mrb[10].mxu0 %v3992_v24  ;;  %1869 = vmatprep.mubr.f32.mxu1 %v4256_v29  ;;  %v5074_v24 = vld [vmem:[#allocation10_spill] sm:$0xff] }
 0x112   : > { %1604 = vmatprep.mubr.f32.mxu0 %v4036_v44  ;;  %3072 = vmatpush1.bf16.msra.mxu0 %v3973_v18  ;;  %v5073_v18 = vld [vmem:[#allocation13_spill] sm:$0xff]  ;;  %v5078_v44 = vld [vmem:[#allocation11_spill] sm:$0xff] }
 0x113   : > { %3073 = vmatprep.subr.bf16.mxu0 %v5072_v51  ;;  %3126 = vmatpush3.bf16.msra.mxu1 %v3123_v56 }
 0x114   : > { %1870 = vmatmul.mubr.f32.gmra.mrb[76].mxu1 %v4228_v57  ;;  %3128 = vmatprep.subr.bf16.mxu1 %v3127_v0  ;;  %v4550_v57 = vld [vmem:[#allocation2 + $0x181] sm:$0xff] }
 0x115   : > { %1605 = vmatmul.mubr.f32.gmra.mrb[12].mxu0 %v4015_v35  ;;  %1874 = vmatprep.mubr.f32.mxu1 %v4266_v39  ;;  %v5076_v35 = vld [vmem:[#allocation30_spill] sm:$0xff] }
 0x116   : > { %1609 = vmatprep.mubr.f32.mxu0 %v4059_v58  ;;  %3075 = vmatpush1.bf16.msra.mxu0 %v3996_v27  ;;  %v5075_v27 = vld [vmem:[#allocation24_spill] sm:$0xff]  ;;  %v5081_v58 = vld [vmem:[#allocation17_spill] sm:$0xff] }
 0x117   : > { %3076 = vmatprep.subr.bf16.mxu0 %v5072_v51  ;;  %3130 = vmatpush3.bf16.msra.mxu1 %v3127_v0  ;;  %v5109_v0 = vld [vmem:[#allocation43_spill] sm:$0xff] }
 0x118   : > { %1875 = vmatmul.mubr.f32.gmra.mrb[78].mxu1 %v4245_v17  ;;  %3132 = vmatprep.subr.bf16.mxu1 %v3131_v9 }
 0x119   : > { %1610 = vmatmul.mubr.f32.gmra.mrb[14].mxu0 %v4038_v45  ;;  %1879 = vmatprep.mubr.f32.mxu1 %v4276_v54  ;;  %v5079_v45 = vld [vmem:[#allocation26_spill] sm:$0xff] }
 0x11a   : > { %1614 = vmatprep.mubr.f32.mxu0 %v4085_v7  ;;  %3078 = vmatpush1.bf16.msra.mxu0 %v4019_v38  ;;  %v5077_v38 = vld [vmem:[#allocation15_spill] sm:$0xff]  ;;  %v5084_v7 = vld [vmem:[#allocation36_spill] sm:$0xff] }
 0x11b   : > { %3079 = vmatprep.subr.bf16.mxu0 %v5072_v51  ;;  %3134 = vmatpush3.bf16.msra.mxu1 %v3131_v9 }
 0x11c   : > { %1880 = vmatmul.mubr.f32.gmra.mrb[80].mxu1 %v4258_v30  ;;  %v2741_v30 = vld [vmem:[#allocation2 + $0x1a1] sm:$0xff] }
 0x11d   : > { %1615 = vmatmul.mubr.f32.gmra.mrb[16].mxu0 %v4061_v59  ;;  %1884 = vmatprep.mubr.f32.mxu1 %v4286_v33  ;;  %v5082_v59 = vld [vmem:[#allocation12_spill] sm:$0xff] }
 0x11e   : > { %1619 = vmatprep.mubr.f32.mxu0 %v4111_v20  ;;  %3081 = vmatpush1.bf16.msra.mxu0 %v4042_v49  ;;  %v5080_v49 = vld [vmem:[#allocation33_spill] sm:$0xff]  ;;  %v5087_v20 = vld [vmem:[#allocation31_spill] sm:$0xff] }
 0x11f   : > { %3082 = vmatprep.subr.bf16.mxu0 %v5072_v51 }
 0x120   : > { %1885 = vmatmul.mubr.f32.gmra.mrb[82].mxu1 %v4268_v42  ;;  %v2709_v42 = vld [vmem:[#allocation2 + $0x1a0] sm:$0xff] }
 0x121   : > { %1620 = vmatmul.mubr.f32.gmra.mrb[18].mxu0 %v4087_v8  ;;  %1889 = vmatprep.mubr.f32.mxu1 %v4296_v50  ;;  %v5085_v8 = vld [vmem:[#allocation19_spill] sm:$0xff] }
 0x122   : > { %1624 = vmatprep.mubr.f32.mxu0 %v4137_v36  ;;  %3084 = vmatpush1.bf16.msra.mxu0 %v4067_v63  ;;  %v5083_v63 = vld [vmem:[#allocation28_spill] sm:$0xff] }
 0x123   : > { %3085 = vmatprep.subr.bf16.mxu0 %v5072_v51  ;;  %v5090_v36 = vld [vmem:[#allocation16_spill] sm:$0xff] }
 0x124   : > { %1890 = vmatmul.mubr.f32.gmra.mrb[84].mxu1 %v4278_v2  ;;  %v5101_v2 = vld [vmem:[#allocation27_spill] sm:$0xff] }
 0x125   : > { %1625 = vmatmul.mubr.f32.gmra.mrb[20].mxu0 %v4113_v21  ;;  %1894 = vmatprep.mubr.f32.mxu1 %v4306_v22  ;;  %v5088_v21 = vld [vmem:[#allocation39_spill] sm:$0xff] }
 0x126   : > { %1629 = vmatprep.mubr.f32.mxu0 %v5073_v18  ;;  %3087 = vmatpush1.bf16.msra.mxu0 %v5074_v24  ;;  %v2749_v18 = vld [vmem:[#allocation2 + $0x82] sm:$0xff]  ;;  %v5110_v24 = vld [vmem:[#allocation45_spill] sm:$0xff] }
 0x127   : > { %3088 = vmatprep.subr.bf16.mxu0 %v5072_v51 }
 0x128   : > { %1895 = vmatmul.mubr.f32.gmra.mrb[86].mxu1 %v5075_v27  ;;  %v2750_v27 = vld [vmem:[#allocation2 + $0x92] sm:$0xff] }
 0x129   : > { %1630 = vmatmul.mubr.f32.gmra.mrb[22].mxu0 %v4139_v37  ;;  %1899 = vmatprep.mubr.f32.mxu1 %v5076_v35  ;;  %v5091_v37 = vld [vmem:[#allocation34_spill] sm:$0xff] }
 0x12a   : > { %1634 = vmatprep.mubr.f32.mxu0 %v5077_v38  ;;  %3090 = vmatpush1.bf16.msra.mxu0 %v5078_v44  ;;  %v2751_v44 = vld [vmem:[#allocation2 + $0x9a] sm:$0xff] }
 0x12b   : > { %3091 = vmatprep.subr.bf16.mxu0 %v5072_v51 }
 0x12c   : > { %1900 = vmatmul.mubr.f32.gmra.mrb[88].mxu1 %v5079_v45  ;;  %v5111_v45 = vld [vmem:[#allocation47_spill] sm:$0xff] }
 0x12d   : > { %1635 = vmatmul.mubr.f32.gmra.mrb[24].mxu0 %v4166_v55  ;;  %1904 = vmatprep.mubr.f32.mxu1 %v5080_v49  ;;  %v5095_v55 = vld [vmem:[#allocation37_spill] sm:$0xff] }
 0x12e   : > { %1639 = vmatprep.mubr.f32.mxu0 %v5081_v58  ;;  %3093 = vmatpush1.bf16.msra.mxu0 %v5082_v59 }
 0x12f   : > { %3094 = vmatprep.subr.bf16.mxu0 %v5072_v51 }
 0x130   : > { %1905 = vmatmul.mubr.f32.gmra.mrb[90].mxu1 %v5083_v63  ;;  %v2753_v63 = vld [vmem:[#allocation2 + $0xb2] sm:$0xff] }
 0x131   : > { %1640 = vmatmul.mubr.f32.gmra.mrb[26].mxu0 %v4193_v16  ;;  %1909 = vmatprep.mubr.f32.mxu1 %v5084_v7  ;;  %v5098_v16 = vld [vmem:[#allocation40_spill] sm:$0xff] }
 0x132   : > { %1644 = vmatprep.mubr.f32.mxu0 %v5085_v8  ;;  %3096 = vmatpush1.bf16.msra.mxu0 %v5086_v11  ;;  %v2754_v8 = vld [vmem:[#allocation2 + $0xc2] sm:$0xff] }
 0x133   : > { %3097 = vmatprep.subr.bf16.mxu0 %v5072_v51 }
 0x134   : > { %1910 = vmatmul.mubr.f32.gmra.mrb[92].mxu1 %v5087_v20  ;;  %v4597_v20 = vld [vmem:[#allocation2 + $0x182] sm:$0xff] }
 0x135   : > { %1645 = vmatmul.mubr.f32.gmra.mrb[28].mxu0 %v4226_v48  ;;  %1914 = vmatprep.mubr.f32.mxu1 %v5088_v21  ;;  %v5100_v48 = vld [vmem:[#allocation25_spill] sm:$0xff] }
 0x136   : > { %1649 = vmatprep.mubr.f32.mxu0 %v5089_v25  ;;  %3099 = vmatpush1.bf16.msra.mxu0 %v5090_v36  ;;  %v2755_v25 = vld [vmem:[#allocation2 + $0xca] sm:$0xff]  ;;  %v2756_v36 = vld [vmem:[#allocation2 + $0xda] sm:$0xff] }
 0x137   : > { %3100 = vmatprep.subr.bf16.mxu0 %v5072_v51  ;;  %v2742_v51 = vld [vmem:[#allocation2 + $0x32] sm:$0xff] }
 0x138   : > { %1915 = vmatmul.mubr.f32.gmra.mrb[94].mxu1 %v5091_v37 }
 0x139   : > { %1650 = vmatmul.mubr.f32.gmra.mrb[30].mxu0 %v4243_v10  ;;  %1919 = vmatprep.mubr.f32.mxu1 %v5092_v40 }
 0x13a   : > { %1654 = vmatprep.mubr.f32.mxu0 %v5093_v41  ;;  %3102 = vmatpush1.bf16.msra.mxu0 %v5094_v53  ;;  %v2757_v41 = vld [vmem:[#allocation2 + $0xe2] sm:$0xff]  ;;  %v2758_v53 = vld [vmem:[#allocation2 + $0xf2] sm:$0xff] }
 0x13c   : > { %1920 = vmatmul.mubr.f32.gmra.mrb[96].mxu1 %v5095_v55 }
 0x13d   : > { %1655 = vmatmul.mubr.f32.gmra.mrb[32].mxu0 %v4256_v29  ;;  %1924 = vmatprep.mubr.f32.mxu1 %v5096_v60  ;;  %v5105_v29 = vld [vmem:[#allocation32_spill] sm:$0xff] }
 0x13e   : > { %1659 = vmatprep.mubr.f32.mxu0 %v5097_v1  ;;  %v2678_v1 = vld [vmem:[#allocation2 + $0x30] sm:$0xff] }
 0x140   : > { %1925 = vmatmul.mubr.f32.gmra.mrb[98].mxu1 %v5098_v16 }
 0x141   : > { %1660 = vmatmul.mubr.f32.gmra.mrb[34].mxu0 %v4266_v39  ;;  %1929 = vmatprep.mubr.f32.mxu1 %v4376_v47 }
 0x142   : > { %1664 = vmatprep.mubr.f32.mxu0 %v5099_v19  ;;  %v2711_v19 = vld [vmem:[#allocation2 + $0x39] sm:$0xff] }
 0x144   : > { %1930 = vmatmul.mubr.f32.gmra.mrb[100].mxu1 %v4358_v26  ;;  %v2740_v26 = vld [vmem:[#allocation2 + $0x199] sm:$0xff] }
 0x145   : > { %1665 = vmatmul.mubr.f32.gmra.mrb[36].mxu0 %v4276_v54  ;;  %1934 = vmatprep.mubr.f32.mxu1 %v4386_v13  ;;  %v5103_v54 = vld [vmem:[#allocation29_spill] sm:$0xff] }
 0x146   : > { %1669 = vmatprep.mubr.f32.mxu0 %v5100_v48 }
 0x148   : > { %1935 = vmatmul.mubr.f32.gmra.mrb[102].mxu1 %v4368_v12  ;;  %v5104_v12 = vld [vmem:[#allocation48_spill] sm:$0xff] }
 0x149   : > { %1670 = vmatmul.mubr.f32.gmra.mrb[38].mxu0 %v4286_v33  ;;  %1939 = vmatprep.mubr.f32.mxu1 %v4550_v57 }
 0x14a   : > { %1674 = vmatprep.mubr.f32.mxu0 %v5101_v2 }
 0x14c   : > { %1940 = vmatmul.mubr.f32.gmra.mrb[104].mxu1 %v5102_v4  ;;  %v2679_v4 = vld [vmem:[#allocation2 + $0x38] sm:$0xff] }
 0x14d   : > { %1675 = vmatmul.mubr.f32.gmra.mrb[40].mxu0 %v4296_v50  ;;  %1944 = vmatprep.mubr.f32.mxu1 %v4556_v3  ;;  %v5106_v50 = vld [vmem:[#allocation35_spill] sm:$0xff] }
 0x14e   : > { %1679 = vmatprep.mubr.f32.mxu0 %v5103_v54 }
 0x14f   : > { %v4562_v10 = vpop.f32.mrb[0].mxu1 }
 0x150   : > { %1945 = vmatmul.mubr.f32.gmra.mrb[106].mxu1 %v5104_v12  ;;  %v1128_v17 = vpop.f32.mrb[1].mxu1  ;;  %v2712_v12 = vld [vmem:[#allocation2 + $0x49] sm:$0xff] }
 0x151   : > { %1680 = vmatmul.mubr.f32.gmra.mrb[42].mxu0 %v4306_v22  ;;  %1949 = vmatprep.mubr.f32.mxu1 %v2740_v26  ;;  %v2680_v17 = vld [vmem:[#allocation2 + $0x48] sm:$0xff] }
 0x152   : > { %1684 = vmatprep.mubr.f32.mxu0 %v5105_v29 }
 0x153   : > { %v4567_v33 = vpop.f32.mrb[2].mxu1 }
 0x154   : > { %1950 = vmatmul.mubr.f32.gmra.mrb[108].mxu1 %v2708_v28  ;;  %v1133_v39 = vpop.f32.mrb[3].mxu1 }
 0x155   : > { %1685 = vmatmul.mubr.f32.gmra.mrb[44].mxu0 %v5076_v35  ;;  %1954 = vmatprep.mubr.f32.mxu1 %v2741_v30 }
 0x156   : > { %1689 = vmatprep.mubr.f32.mxu0 %v5106_v50 }
 0x157   : > { %v4571_v43 = vpop.f32.mrb[4].mxu1 }
 0x158   : > { %1955 = vmatmul.mubr.f32.gmra.mrb[110].mxu1 %v2709_v42  ;;  %v1138_v22 = vpop.f32.mrb[5].mxu1 }
 0x159   : > { %1690 = vmatmul.mubr.f32.gmra.mrb[46].mxu0 %v5080_v49  ;;  %2863 = vmatprep.mubr.f32.mxu1 %v2742_v51  ;;  %v2752_v49 = vld [vmem:[#allocation2 + $0xaa] sm:$0xff] }
 0x15a   : > { %1694 = vmatprep.mubr.f32.mxu0 %v5107_v31 }
 0x15b   : > { %v4575_v61 = vpop.f32.mrb[6].mxu1 }
 0x15c   : > { %2864 = vmatmul.mubr.f32.vlgmr.msra.gmra.mrb[112].mxu1 %v2743_v32  ;;  %v1143_v5 = vpop.f32.mrb[7].mxu1  ;;  %v2683_v32 = vld [vmem:[#allocation2 + $0x68] sm:$0xff] }
 0x15d   : > { %1695 = vmatmul.mubr.f32.gmra.mrb[48].mxu0 %v5084_v7  ;;  %2866 = vmatprep.mubr.f32.mxu1 %v2744_v52  ;;  %v5112_v7 = vld [vmem:[#allocation49_spill] sm:$0xff] }
 0x15e   : > { %1699 = vmatprep.mubr.f32.mxu0 %v5108_v62  ;;  %v2716_v52 = vld [vmem:[#allocation2 + $0x79] sm:$0xff] }
 0x15f   : > { %v4579_v56 = vpop.f32.mrb[8].mxu1 }
 0x160   : > { %2867 = vmatmul.mubr.f32.gmra.mrb[114].mxu1 %v2745_v46  ;;  %v1148_v6 = vpop.f32.mrb[9].mxu1  ;;  %v2684_v46 = vld [vmem:[#allocation2 + $0x78] sm:$0xff] }
 0x161   : > { %1700 = vmatmul.mubr.f32.gmra.mrb[50].mxu0 %v5088_v21  ;;  %2869 = vmatprep.mubr.f32.mxu1 %v2746_v14  ;;  %v2717_v6 = vld [vmem:[#allocation2 + $0x81] sm:$0xff] }
 0x162   : > { %1704 = vmatprep.mubr.f32.mxu0 %v5109_v0 }
 0x163   : > { %v4583_v34 = vpop.f32.mrb[10].mxu1 }
 0x164   : > { %2870 = vmatmul.mubr.f32.gmra.mrb[116].mxu1 %v2747_v23  ;;  %v1153_v9 = vpop.f32.mrb[11].mxu1 }
 0x165   : > { %1705 = vmatmul.mubr.f32.gmra.mrb[52].mxu0 %v5092_v40  ;;  %2872 = vmatprep.mubr.f32.mxu1 %v2748_v15  ;;  %v2685_v15 = vld [vmem:[#allocation2 + $0x80] sm:$0xff] }
 0x166   : > { %1709 = vmatprep.mubr.f32.mxu0 %v5110_v24 }
 0x167   : > { %v4587_v35 = vpop.f32.mrb[12].mxu1 }
 0x168   : > { %2873 = vmatmul.mubr.f32.gmra.mrb[118].mxu1 %v2749_v18  ;;  %v1158_v38 = vpop.f32.mrb[13].mxu1 }
 0x169   : > { %1710 = vmatmul.mubr.f32.gmra.mrb[54].mxu0 %v5096_v60  ;;  %2875 = vmatprep.mubr.f32.mxu1 %v2750_v27 }
 0x16a   : > { %1714 = vmatprep.mubr.f32.mxu0 %v5111_v45 }
 0x16b   : > { %v4591_v58 = vpop.f32.mrb[14].mxu1 }
 0x16c   : > { %2876 = vmatmul.mubr.f32.gmra.mrb[120].mxu1 %v2751_v44  ;;  %v1163_v59 = vpop.f32.mrb[15].mxu1 }
 0x16d   : > { %1715 = vmatmul.mubr.f32.gmra.mrb[56].mxu0 %v4376_v47  ;;  %2878 = vmatprep.mubr.f32.mxu1 %v2752_v49  ;;  %v4603_v47 = vld [vmem:[#allocation2 + $0x18a] sm:$0xff] }
 0x16e   : > { %1719 = vmatprep.mubr.f32.mxu0 %v5112_v7 }
 0x16f   : > { %v4595_v11 = vpop.f32.mrb[16].mxu1 }
 0x170   : > { %2879 = vmatmul.mubr.f32.gmra.mrb[122].mxu1 %v2753_v63  ;;  %v1168_v21 = vpop.f32.mrb[17].mxu1 }
 0x171   : > { %1720 = vmatmul.mubr.f32.gmra.mrb[58].mxu0 %v4386_v13  ;;  %2881 = vmatprep.mubr.f32.mxu1 %v2754_v8  ;;  %v2710_v13 = vld [vmem:[#allocation2 + $0x31] sm:$0xff] }
 0x172   : > { %1724 = vmatprep.mubr.f32.mxu0 %v4597_v20 }
 0x173   : > { %v4601_v37 = vpop.f32.mrb[18].mxu1 }
 0x174   : > { %2882 = vmatmul.mubr.f32.gmra.mrb[124].mxu1 %v2755_v25  ;;  %v1173_v40 = vpop.f32.mrb[19].mxu1 }
 0x175   : > { %1725 = vmatmul.mubr.f32.gmra.mrb[60].mxu0 %v4550_v57  ;;  %2884 = vmatprep.mubr.f32.mxu1 %v2756_v36 }
 0x176   : > { %1729 = vmatprep.mubr.f32.mxu0 %v4603_v47 }
 0x177   : > { %v4607_v55 = vpop.f32.mrb[20].mxu1 }
 0x178   : > { %2885 = vmatmul.mubr.f32.gmra.mrb[126].mxu1 %v2757_v41  ;;  %v1178_v60 = vpop.f32.mrb[21].mxu1 }
 0x179   : > { %1730 = vmatmul.mubr.f32.gmra.mrb[62].mxu0 %v4556_v3  ;;  %2887 = vmatprep.mubr.f32.mxu1 %v2758_v53 }
 0x17a   : > { %1799 = vmatprep.mubr.f32.mxu0 %v2710_v13 }
 0x17b   : > { %v4610_v16 = vpop.f32.mrb[22].mxu1 }
 0x17c   : > { %2888 = vmatmul.mubr.f32.gmra.mrb[128].mxu1 %v5100_v48  ;;  %v1183_v57 = vpop.f32.mrb[23].mxu1  ;;  %v2713_v48 = vld [vmem:[#allocation2 + $0x51] sm:$0xff] }
 0x17d   : > { %1800 = vmatmul.mubr.f32.vlgmr.msra.gmra.mrb[0].mxu0 %v2678_v1  ;;  %2890 = vmatprep.mubr.f32.mxu1 %v5101_v2  ;;  %v2681_v2 = vld [vmem:[#allocation2 + $0x50] sm:$0xff] }
 0x17e   : > { %1804 = vmatprep.mubr.f32.mxu0 %v2711_v19 }
 0x17f   : > { %v4614_v26 = vpop.f32.mrb[24].mxu1 }
 0x180   : > { %2891 = vmatmul.mubr.f32.gmra.mrb[130].mxu1 %v5103_v54  ;;  %v1188_v3 = vpop.f32.mrb[25].mxu1  ;;  %v2714_v54 = vld [vmem:[#allocation2 + $0x61] sm:$0xff] }
 0x181   : > { %1805 = vmatmul.mubr.f32.gmra.mrb[2].mxu0 %v2679_v4  ;;  %2893 = vmatprep.mubr.f32.mxu1 %v5105_v29  ;;  %v2682_v29 = vld [vmem:[#allocation2 + $0x60] sm:$0xff] }
 0x182   : > { %1809 = vmatprep.mubr.f32.mxu0 %v2712_v12 }
 0x183   : > { %v4618_v28 = vpop.f32.mrb[26].mxu1 }
 0x184   : > { %2894 = vmatmul.mubr.f32.gmra.mrb[132].mxu1 %v5106_v50  ;;  %v1193_v30 = vpop.f32.mrb[27].mxu1  ;;  %v2715_v50 = vld [vmem:[#allocation2 + $0x69] sm:$0xff] }
 0x185   : > { %1810 = vmatmul.mubr.f32.gmra.mrb[4].mxu0 %v2680_v17  ;;  %2896 = vmatprep.mubr.f32.mxu1 %v5107_v31 }
 0x186   : > { %1814 = vmatprep.mubr.f32.mxu0 %v2713_v48 }
 0x187   : > { %v4622_v39 = vpop.f32.mrb[28].mxu1 }
 0x188   : > { %2897 = vmatmul.mubr.f32.gmra.mrb[134].mxu1 %v5108_v62  ;;  %v1198_v42 = vpop.f32.mrb[29].mxu1  ;;  %v2772_v62 = vld [vmem:[#allocation2 + $0x19a] sm:$0xff] }
 0x189   : > { %1815 = vmatmul.mubr.f32.gmra.mrb[6].mxu0 %v2681_v2  ;;  %2899 = vmatprep.mubr.f32.mxu1 %v5109_v0  ;;  %v2773_v0 = vld [vmem:[#allocation2 + $0x1a2] sm:$0xff] }
 0x18a   : > { %1819 = vmatprep.mubr.f32.mxu0 %v2714_v54 }
 0x18b   : > { %v4626_v51 = vpop.f32.mrb[30].mxu1 }
 0x18c   : > { %2900 = vmatmul.mubr.f32.gmra.mrb[136].mxu1 %v5110_v24  ;;  %v1203_v22 = vpop.f32.mrb[31].mxu1 }
 0x18d   : > { %1820 = vmatmul.mubr.f32.gmra.mrb[8].mxu0 %v2682_v29  ;;  %2902 = vmatprep.mubr.f32.mxu1 %v5111_v45 }
 0x18e   : > { %1824 = vmatprep.mubr.f32.mxu0 %v2715_v50 }
 0x18f   : > { %v4630_v31 = vpop.f32.mrb[32].mxu1 }
 0x190   : > { %2903 = vmatmul.mubr.f32.gmra.mrb[138].mxu1 %v5112_v7  ;;  %v1208_v5 = vpop.f32.mrb[33].mxu1 }
 0x191   : > { %1825 = vmatmul.mubr.f32.gmra.mrb[10].mxu0 %v2683_v32  ;;  %2905 = vmatprep.mubr.f32.mxu1 %v4597_v20 }
 0x192   : > { %1829 = vmatprep.mubr.f32.mxu0 %v2716_v52 }
 0x193   : > { %v4634_v14 = vpop.f32.mrb[34].mxu1 }
 0x194   : > { %2906 = vmatmul.mubr.f32.gmra.mrb[140].mxu1 %v4603_v47  ;;  %v1213_v23 = vpop.f32.mrb[35].mxu1 }
 0x195   : > { %1830 = vmatmul.mubr.f32.gmra.mrb[12].mxu0 %v2684_v46  ;;  %2908 = vmatprep.mubr.f32.mxu1 %v2772_v62 }
 0x196   : > { %1834 = vmatprep.mubr.f32.mxu0 %v2717_v6 }
 0x197   : > { %v4637_v9 = vpop.f32.mrb[36].mxu1 }
 0x198   : > { %2909 = vmatmul.mubr.f32.gmra.mrb[142].mxu1 %v2773_v0  ;;  %v1218_v18 = vpop.f32.mrb[37].mxu1  ;;  %v4668_v0 = vld [vmem:[%s4969_s2] ss:$0 sm:$0xff] }
 0x199   : > { %1835 = vmatmul.mubr.f32.gmra.mrb[14].mxu0 %v2685_v15  ;;  %v1167_v15 = vadd.f32 %v4668_v0, %v4595_v11  ;;  %v1177_v11 = vadd.f32 %v4668_v0, %v4607_v55  ;;  %v1187_v55 = vadd.f32 %v4668_v0, %v4614_v26  ;;  %v1197_v26 = vadd.f32 %v4668_v0, %v4622_v39 }
 0x19a   : > { %v1207_v39 = vadd.f32 %v4668_v0, %v4630_v31 }
 0x19b   : > { %v4639_v24 = vpop.f32.mrb[38].mxu1 }
 0x19c   : > { %v1223_v27 = vpop.f32.mrb[39].mxu1 }
 0x19f   : > { %v4641_v38 = vpop.f32.mrb[40].mxu1 }
 0x1a0   : > { %v1228_v44 = vpop.f32.mrb[41].mxu1 }
 0x1a3   : > { %v4643_v45 = vpop.f32.mrb[42].mxu1 }
 0x1a4   : > { %v1233_v49 = vpop.f32.mrb[43].mxu1 }
 0x1a7   : > { %v4645_v59 = vpop.f32.mrb[44].mxu1 }
 0x1a8   : > { %v1238_v63 = vpop.f32.mrb[45].mxu1 }
 0x1ab   : > { %v4647_v7 = vpop.f32.mrb[46].mxu1 }
 0x1ac   : > { %v1243_v8 = vpop.f32.mrb[47].mxu1 }
 0x1ad   : > { %v1172_v8 = vadd.f32 %v4668_v0, %v4601_v37  ;;  %v1182_v37 = vadd.f32 %v4668_v0, %v4610_v16  ;;  %v1192_v16 = vadd.f32 %v4668_v0, %v4618_v28  ;;  %v1202_v28 = vadd.f32 %v4668_v0, %v4626_v51 }
 0x1ae   : > { %v1212_v51 = vadd.f32 %v4668_v0, %v4634_v14 }
 0x1af   : > { %v4649_v20 = vpop.f32.mrb[48].mxu1 }
 0x1b0   : > { %v1248_v21 = vpop.f32.mrb[49].mxu1 }
 0x1b3   : > { %v4651_v25 = vpop.f32.mrb[50].mxu1 }
 0x1b4   : > { %v1253_v36 = vpop.f32.mrb[51].mxu1 }
 0x1b7   : > { %v4653_v47 = vpop.f32.mrb[52].mxu1 }
 0x1b8   : > { %v1258_v40 = vpop.f32.mrb[53].mxu1 }
 0x1bb   : > { %v4655_v41 = vpop.f32.mrb[54].mxu1 }
 0x1bc   : > { %v1263_v53 = vpop.f32.mrb[55].mxu1 }
 0x1bf   : > { %v4657_v13 = vpop.f32.mrb[56].mxu1 }
 0x1c0   : > { %v1268_v60 = vpop.f32.mrb[57].mxu1 }
 0x1c3   : > { %v4659_v1 = vpop.f32.mrb[58].mxu1 }
 0x1c4   : > { %v1273_v19 = vpop.f32.mrb[59].mxu1 }
 0x1c7   : > { %v4661_v57 = vpop.f32.mrb[60].mxu1 }
 0x1c8   : > { %v1278_v4 = vpop.f32.mrb[61].mxu1 }
 0x1cb   : > { %v4663_v12 = vpop.f32.mrb[62].mxu1 }
 0x1cc   : > { %v1283_v3 = vpop.f32.mrb[63].mxu1 }
 0x1cf   : > { %v1841_v17 = vpop.f32.mrb[64].mxu1 }
 0x1d0   : > { %v1843_v48 = vpop.f32.mrb[65].mxu1 }
 0x1d3   : > { %v1846_v30 = vpop.f32.mrb[66].mxu1 }
 0x1d4   : > { %v1848_v2 = vpop.f32.mrb[67].mxu1 }
 0x1d7   : > { %v1851_v54 = vpop.f32.mrb[68].mxu1 }
 0x1d8   : > { %v1853_v42 = vpop.f32.mrb[69].mxu1 }
 0x1db   : > { %v1856_v29 = vpop.f32.mrb[70].mxu1 }
 0x1dc   : > { %v1858_v50 = vpop.f32.mrb[71].mxu1 }
 0x1df   : > { %v1861_v22 = vpop.f32.mrb[72].mxu1 }
 0x1e0   : > { %v1863_v32 = vpop.f32.mrb[73].mxu1 }
 0x1e3   : > { %v1866_v52 = vpop.f32.mrb[74].mxu1 }
 0x1e4   : > { %v1868_v5 = vpop.f32.mrb[75].mxu1 }
 0x1e7   : > { %v1871_v46 = vpop.f32.mrb[76].mxu1 }
 0x1e8   : > { %v1873_v62 = vpop.f32.mrb[77].mxu1 }
 0x1eb   : > { %v1876_v6 = vpop.f32.mrb[78].mxu1 }
 0x1ec   : > { %v1878_v23 = vpop.f32.mrb[79].mxu1 }
 0x1ef   : > { %v4672_v18 = vpop.f32.mrb[80].mxu1 }
 0x1f0   : > { %v1616_v27 = vpop.f32.mrb[16].mxu0  ;;  %v1883_v44 = vpop.f32.mrb[81].mxu1 }
 0x1f1   : > { %v3184_v49 = vadd.f32 %v1616_v27, %v1167_v15  ;;  %v1618_v63 = vpop.f32.mrb[17].mxu0 }
 0x1f3   : > { %v4676_v21 = vpop.f32.mrb[82].mxu1  ;;  %v4678_v36 = vadd.f32 %v3184_v49, %v1841_v17 }
 0x1f4   : > { %v1621_v40 = vpop.f32.mrb[18].mxu0  ;;  %v1888_v53 = vpop.f32.mrb[83].mxu1 }
 0x1f5   : > { %v3187_v60 = vadd.f32 %v1621_v40, %v1172_v8  ;;  %v1623_v19 = vpop.f32.mrb[19].mxu0 }
 0x1f7   : > { %v4682_v4 = vpop.f32.mrb[84].mxu1  ;;  %v4684_v3 = vadd.f32 %v3187_v60, %v1846_v30 }
 0x1f8   : > { %v1626_v48 = vpop.f32.mrb[20].mxu0  ;;  %v1893_v2 = vpop.f32.mrb[85].mxu1 }
 0x1f9   : > { %v3190_v42 = vadd.f32 %v1626_v48, %v1177_v11  ;;  %v1628_v50 = vpop.f32.mrb[21].mxu0 }
 0x1fb   : > { %v4688_v17 = vpop.f32.mrb[86].mxu1  ;;  %v4690_v32 = vadd.f32 %v3190_v42, %v1851_v54 }
 0x1fc   : > { %v1631_v5 = vpop.f32.mrb[22].mxu0  ;;  %v1898_v62 = vpop.f32.mrb[87].mxu1 }
 0x1fd   : > { %v3193_v23 = vadd.f32 %v1631_v5, %v1182_v37  ;;  %v1633_v15 = vpop.f32.mrb[23].mxu0 }
 0x1ff   : > { %v4694_v30 = vpop.f32.mrb[88].mxu1  ;;  %v4696_v27 = vadd.f32 %v3193_v23, %v1856_v29 }
 0x200   : > { %v1636_v44 = vpop.f32.mrb[24].mxu0  ;;  %v1903_v49 = vpop.f32.mrb[89].mxu1 }
 0x201   : > { %v3196_v63 = vadd.f32 %v1636_v44, %v1187_v55  ;;  %v1638_v8 = vpop.f32.mrb[25].mxu0 }
 0x203   : > { %v4700_v54 = vpop.f32.mrb[90].mxu1  ;;  %v4702_v40 = vadd.f32 %v3196_v63, %v1861_v22 }
 0x204   : > { %v1641_v53 = vpop.f32.mrb[26].mxu0  ;;  %v1908_v60 = vpop.f32.mrb[91].mxu1 }
 0x205   : > { %v3199_v19 = vadd.f32 %v1641_v53, %v1192_v16  ;;  %v1643_v11 = vpop.f32.mrb[27].mxu0 }
 0x207   : > { %v4706_v29 = vpop.f32.mrb[92].mxu1  ;;  %v4708_v48 = vadd.f32 %v3199_v19, %v1866_v52 }
 0x208   : > { %v1646_v2 = vpop.f32.mrb[28].mxu0  ;;  %v1913_v42 = vpop.f32.mrb[93].mxu1 }
 0x209   : > { %v3202_v50 = vadd.f32 %v1646_v2, %v1197_v26  ;;  %v1648_v37 = vpop.f32.mrb[29].mxu0 }
 0x20b   : > { %v4712_v22 = vpop.f32.mrb[94].mxu1  ;;  %v4714_v5 = vadd.f32 %v3202_v50, %v1871_v46 }
 0x20c   : > { %v1651_v62 = vpop.f32.mrb[30].mxu0  ;;  %v1918_v23 = vpop.f32.mrb[95].mxu1 }
 0x20d   : > { %v3205_v15 = vadd.f32 %v1651_v62, %v1202_v28  ;;  %v1653_v55 = vpop.f32.mrb[31].mxu0 }
 0x20f   : > { %v4718_v52 = vpop.f32.mrb[96].mxu1  ;;  %v4720_v44 = vadd.f32 %v3205_v15, %v1876_v6  ;;  %v1217_v6 = vadd.f32 %v4668_v0, %v4637_v9 }
 0x210   : > { %v1656_v49 = vpop.f32.mrb[32].mxu0  ;;  %v1923_v63 = vpop.f32.mrb[97].mxu1 }
 0x211   : > { %v3208_v8 = vadd.f32 %v1656_v49, %v1207_v39  ;;  %v1658_v16 = vpop.f32.mrb[33].mxu0 }
 0x213   : > { %v4724_v46 = vpop.f32.mrb[98].mxu1  ;;  %v4727_v53 = vadd.f32 %v3208_v8, %v4672_v18  ;;  %v1222_v18 = vadd.f32 %v4668_v0, %v4639_v24 }
 0x214   : > { %v1661_v60 = vpop.f32.mrb[34].mxu0  ;;  %v1928_v19 = vpop.f32.mrb[99].mxu1 }
 0x215   : > { %v3211_v11 = vadd.f32 %v1661_v60, %v1212_v51  ;;  %v1663_v31 = vpop.f32.mrb[35].mxu0 }
 0x217   : > { %v4731_v26 = vpop.f32.mrb[100].mxu1  ;;  %v4734_v2 = vadd.f32 %v3211_v11, %v4676_v21  ;;  %v1227_v21 = vadd.f32 %v4668_v0, %v4641_v38 }
 0x218   : > { %v1666_v42 = vpop.f32.mrb[36].mxu0  ;;  %v1933_v50 = vpop.f32.mrb[101].mxu1 }
 0x219   : > { %v3214_v14 = vadd.f32 %v1666_v42, %v1217_v6  ;;  %v1668_v37 = vpop.f32.mrb[37].mxu0 }
 0x21b   : > { %v4738_v28 = vpop.f32.mrb[102].mxu1  ;;  %v4741_v62 = vadd.f32 %v3214_v14, %v4682_v4  ;;  %v1232_v4 = vadd.f32 %v4668_v0, %v4643_v45 }
 0x21c   : > { %v1671_v23 = vpop.f32.mrb[38].mxu0  ;;  %v1938_v15 = vpop.f32.mrb[103].mxu1 }
 0x21d   : > { %v3217_v9 = vadd.f32 %v1671_v23, %v1222_v18  ;;  %v1673_v55 = vpop.f32.mrb[39].mxu0 }
 0x21f   : > { %v4745_v39 = vpop.f32.mrb[104].mxu1  ;;  %v4748_v49 = vadd.f32 %v3217_v9, %v4688_v17  ;;  %v1237_v17 = vadd.f32 %v4668_v0, %v4645_v59 }
 0x220   : > { %v1676_v63 = vpop.f32.mrb[40].mxu0  ;;  %v1943_v8 = vpop.f32.mrb[105].mxu1 }
 0x221   : > { %v3220_v24 = vadd.f32 %v1676_v63, %v1227_v21  ;;  %v1678_v16 = vpop.f32.mrb[41].mxu0 }
 0x223   : > { %v4752_v51 = vpop.f32.mrb[106].mxu1  ;;  %v4755_v60 = vadd.f32 %v3220_v24, %v4694_v30  ;;  %v1242_v30 = vadd.f32 %v4668_v0, %v4647_v7 }
 0x224   : > { %v1681_v19 = vpop.f32.mrb[42].mxu0  ;;  %v1948_v11 = vpop.f32.mrb[107].mxu1 }
 0x225   : > { %v3223_v38 = vadd.f32 %v1681_v19, %v1232_v4  ;;  %v1683_v31 = vpop.f32.mrb[43].mxu0 }
 0x227   : > { %v4759_v6 = vpop.f32.mrb[108].mxu1  ;;  %v4762_v42 = vadd.f32 %v3223_v38, %v4700_v54  ;;  %v1247_v54 = vadd.f32 %v4668_v0, %v4649_v20 }
 0x228   : > { %v1686_v50 = vpop.f32.mrb[44].mxu0  ;;  %v1953_v14 = vpop.f32.mrb[109].mxu1 }
 0x229   : > { %v3226_v45 = vadd.f32 %v1686_v50, %v1237_v17  ;;  %v1688_v37 = vpop.f32.mrb[45].mxu0 }
 0x22b   : > { %v4766_v18 = vpop.f32.mrb[110].mxu1  ;;  %v4769_v23 = vadd.f32 %v3226_v45, %v4706_v29  ;;  %v1252_v29 = vadd.f32 %v4668_v0, %v4651_v25 }
 0x22c   : > { %v1691_v15 = vpop.f32.mrb[46].mxu0  ;;  %v1958_v9 = vpop.f32.mrb[111].mxu1 }
 0x22d   : > { %v3229_v59 = vadd.f32 %v1691_v15, %v1242_v30  ;;  %v1693_v55 = vpop.f32.mrb[47].mxu0 }
 0x22e   : > { %v1267_v55 = vadd.f32 %v4668_v0, %v4657_v13 }
 0x22f   : > { %v4773_v21 = vpop.f32.mrb[112].mxu1  ;;  %v4776_v63 = vadd.f32 %v3229_v59, %v4712_v22  ;;  %v1257_v22 = vadd.f32 %v4668_v0, %v4653_v47 }
 0x230   : > { %v1696_v8 = vpop.f32.mrb[48].mxu0  ;;  %v4778_v24 = vpop.f32.mrb[113].mxu1 }
 0x231   : > { %v3232_v7 = vadd.f32 %v1696_v8, %v1247_v54  ;;  %v1698_v16 = vpop.f32.mrb[49].mxu0 }
 0x233   : > { %v4782_v4 = vpop.f32.mrb[114].mxu1  ;;  %v4785_v19 = vadd.f32 %v3232_v7, %v4718_v52  ;;  %v1262_v52 = vadd.f32 %v4668_v0, %v4655_v41 }
 0x234   : > { %v1701_v11 = vpop.f32.mrb[50].mxu0  ;;  %v4787_v20 = vpop.f32.mrb[115].mxu1 }
 0x235   : > { %v3235_v38 = vadd.f32 %v1701_v11, %v1252_v29  ;;  %v1703_v31 = vpop.f32.mrb[51].mxu0 }
 0x236   : > { %v1272_v31 = vadd.f32 %v4668_v0, %v4659_v1  ;;  %v1277_v1 = vadd.f32 %v4668_v0, %v4661_v57  ;;  %v1282_v57 = vadd.f32 %v4668_v0, %v4663_v12  ;;  %v1127_v12 = vadd.f32 %v4668_v0, %v4562_v10 }
 0x237   : > { %v4791_v17 = vpop.f32.mrb[116].mxu1  ;;  %v4794_v50 = vadd.f32 %v3235_v38, %v4724_v46  ;;  %v1132_v10 = vadd.f32 %v4668_v0, %v4567_v33  ;;  %v1137_v33 = vadd.f32 %v4668_v0, %v4571_v43 }
 0x238   : > { %v1706_v14 = vpop.f32.mrb[52].mxu0  ;;  %v4796_v25 = vpop.f32.mrb[117].mxu1 }
 0x239   : > { %v3238_v45 = vadd.f32 %v1706_v14, %v1257_v22  ;;  %v1708_v37 = vpop.f32.mrb[53].mxu0 }
 0x23b   : > { %v4800_v30 = vpop.f32.mrb[118].mxu1  ;;  %v4803_v15 = vadd.f32 %v3238_v45, %v4731_v26 }
 0x23c   : > { %v1711_v9 = vpop.f32.mrb[54].mxu0  ;;  %v4805_v47 = vpop.f32.mrb[119].mxu1 }
 0x23d   : > { %v3241_v59 = vadd.f32 %v1711_v9, %v1262_v52  ;;  %v1713_v46 = vpop.f32.mrb[55].mxu0 }
 0x23f   : > { %v2877_v54 = vpop.f32.mrb[120].mxu1  ;;  %v4810_v8 = vadd.f32 %v3241_v59, %v4738_v28 }
 0x240   : > { %v1716_v41 = vpop.f32.mrb[56].mxu0  ;;  %v2072_v7 = vadd.f32 %v4684_v3, %v2877_v54  ;;  %v2066_v16 = vpop.f32.mrb[121].mxu1 }
 0x241   : > { %v3244_v26 = vadd.f32 %v1716_v41, %v1267_v55  ;;  %v1718_v29 = vpop.f32.mrb[57].mxu0  ;;  %v2067_v11 = vadd.f32 %v4678_v36, %v2066_v16 }
 0x242   : > { %v2194_v38 = vmax.f32 %v2072_v7, 0.0 }
 0x243   : > { %v2193_v22 = vmax.f32 %v2067_v11, 0.0  ;;  %v2880_v13 = vpop.f32.mrb[122].mxu1  ;;  %v4817_v14 = vadd.f32 %v3244_v26, %v4745_v39 }
 0x244   : > { %2226 = vst [vmem:[%s3620_s5 + $0x48] sm:$0xff] %v2194_v38  ;;  %v1721_v28 = vpop.f32.mrb[58].mxu0  ;;  %v2082_v3 = vadd.f32 %v4696_v27, %v2880_v13  ;;  %v2076_v45 = vpop.f32.mrb[123].mxu1 }
 0x245   : > { %2225 = vst [vmem:[%s3620_s5 + $0x40] sm:$0xff] %v2193_v22  ;;  %v3247_v37 = vadd.f32 %v1721_v28, %v1272_v31  ;;  %v1723_v52 = vpop.f32.mrb[59].mxu0  ;;  %v2077_v36 = vadd.f32 %v4690_v32, %v2076_v45 }
 0x246   : > { %v2196_v9 = vmax.f32 %v2082_v3, 0.0 }
 0x247   : > { %v2195_v59 = vmax.f32 %v2077_v36, 0.0  ;;  %v2883_v46 = vpop.f32.mrb[124].mxu1  ;;  %v4826_v39 = vadd.f32 %v3247_v37, %v4752_v51 }
 0x248   : > { %2228 = vst [vmem:[%s3620_s5 + $0x58] sm:$0xff] %v2196_v9  ;;  %v1726_v55 = vpop.f32.mrb[60].mxu0  ;;  %v2092_v27 = vadd.f32 %v4708_v48, %v2883_v46  ;;  %v2086_v54 = vpop.f32.mrb[125].mxu1 }
 0x249   : > { %2227 = vst [vmem:[%s3620_s5 + $0x50] sm:$0xff] %v2195_v59  ;;  %v3250_v41 = vadd.f32 %v1726_v55, %v1277_v1  ;;  %v1728_v7 = vpop.f32.mrb[61].mxu0  ;;  %v2087_v32 = vadd.f32 %v4702_v40, %v2086_v54 }
 0x24a   : > { %v2198_v16 = vmax.f32 %v2092_v27, 0.0 }
 0x24b   : > { %v2197_v26 = vmax.f32 %v2087_v32, 0.0  ;;  %v2886_v29 = vpop.f32.mrb[126].mxu1  ;;  %v4835_v51 = vadd.f32 %v3250_v41, %v4759_v6 }
 0x24c   : > { %2230 = vst [vmem:[%s3620_s5 + $0x68] sm:$0xff] %v2198_v16  ;;  %v1731_v11 = vpop.f32.mrb[62].mxu0  ;;  %v2102_v48 = vadd.f32 %v4720_v44, %v2886_v29  ;;  %v2096_v38 = vpop.f32.mrb[127].mxu1 }
 0x24d   : > { %2229 = vst [vmem:[%s3620_s5 + $0x60] sm:$0xff] %v2197_v26  ;;  %v3253_v31 = vadd.f32 %v1731_v11, %v1282_v57  ;;  %v1733_v22 = vpop.f32.mrb[63].mxu0  ;;  %v2097_v40 = vadd.f32 %v4714_v5, %v2096_v38  ;;  %v1142_v38 = vadd.f32 %v4668_v0, %v4575_v61 }
 0x24e   : > { %v2200_v13 = vmax.f32 %v2102_v48, 0.0 }
 0x24f   : > { %v2199_v28 = vmax.f32 %v2097_v40, 0.0  ;;  %v2889_v3 = vpop.f32.mrb[128].mxu1  ;;  %v4844_v6 = vadd.f32 %v3253_v31, %v4766_v18 }
 0x250   : > { %2232 = vst [vmem:[%s3620_s5 + $0x78] sm:$0xff] %v2200_v13  ;;  %v1801_v45 = vpop.f32.mrb[0].mxu0  ;;  %v2112_v44 = vadd.f32 %v4734_v2, %v2889_v3  ;;  %v2106_v37 = vpop.f32.mrb[129].mxu1 }
 0x251   : > { %2231 = vst [vmem:[%s3620_s5 + $0x70] sm:$0xff] %v2199_v28  ;;  %v3168_v52 = vadd.f32 %v1801_v45, %v1127_v12  ;;  %v1803_v36 = vpop.f32.mrb[1].mxu0  ;;  %v2107_v5 = vadd.f32 %v4727_v53, %v2106_v37  ;;  %v1147_v45 = vadd.f32 %v4668_v0, %v4579_v56 }
 0x252   : > { %v2202_v9 = vmax.f32 %v2112_v44, 0.0 }
 0x253   : > { %v2027_v1 = vadd.f32 %v3168_v52, %v4778_v24  ;;  %v2201_v18 = vmax.f32 %v2107_v5, 0.0  ;;  %v2892_v59 = vpop.f32.mrb[130].mxu1 }
 0x254   : > { %2234 = vst [vmem:[%s3620_s5 + $0x88] sm:$0xff] %v2202_v9  ;;  %v1806_v46 = vpop.f32.mrb[2].mxu0  ;;  %v2122_v2 = vadd.f32 %v4748_v49, %v2892_v59  ;;  %v2116_v55 = vpop.f32.mrb[131].mxu1 }
 0x255   : > { %v2185_v27 = vmax.f32 %v2027_v1, 0.0  ;;  %2233 = vst [vmem:[%s3620_s5 + $0x80] sm:$0xff] %v2201_v18  ;;  %v3170_v54 = vadd.f32 %v1806_v46, %v1132_v10  ;;  %v1808_v53 = vpop.f32.mrb[3].mxu0  ;;  %v2117_v41 = vadd.f32 %v4741_v62, %v2116_v55  ;;  %v1152_v1 = vadd.f32 %v4668_v0, %v4583_v34 }
 0x256   : > { %v2204_v7 = vmax.f32 %v2122_v2, 0.0  ;;  %v1157_v53 = vadd.f32 %v4668_v0, %v4587_v35 }
 0x257   : > { %2217 = vst [vmem:[%s3620_s5] sm:$0xff] %v2185_v27  ;;  %v2032_v24 = vadd.f32 %v3170_v54, %v4773_v21  ;;  %v2203_v32 = vmax.f32 %v2117_v41, 0.0  ;;  %v2895_v16 = vpop.f32.mrb[132].mxu1 }
 0x258   : > { %2236 = vst [vmem:[%s3620_s5 + $0x98] sm:$0xff] %v2204_v7  ;;  %v1811_v49 = vpop.f32.mrb[4].mxu0  ;;  %v2132_v57 = vadd.f32 %v4762_v42, %v2895_v16  ;;  %v2126_v26 = vpop.f32.mrb[133].mxu1 }
 0x259   : > { %v2186_v29 = vmax.f32 %v2032_v24, 0.0  ;;  %2235 = vst [vmem:[%s3620_s5 + $0x90] sm:$0xff] %v2203_v32  ;;  %v3172_v62 = vadd.f32 %v1811_v49, %v1137_v33  ;;  %v1813_v11 = vpop.f32.mrb[5].mxu0  ;;  %v2127_v48 = vadd.f32 %v4755_v60, %v2126_v26 }
 0x25a   : > { %v2206_v43 = vmax.f32 %v2132_v57, 0.0 }
 0x25b   : > { %2218 = vst [vmem:[%s3620_s5 + $0x8] sm:$0xff] %v2186_v29  ;;  %v2037_v21 = vadd.f32 %v3172_v62, %v4787_v20  ;;  %v2205_v31 = vmax.f32 %v2127_v48, 0.0  ;;  %v2898_v22 = vpop.f32.mrb[134].mxu1 }
 0x25c   : > { %2238 = vst [vmem:[%s3620_s5 + $0xa8] sm:$0xff] %v2206_v43  ;;  %v1816_v42 = vpop.f32.mrb[6].mxu0  ;;  %v2142_v40 = vadd.f32 %v4776_v63, %v2898_v22  ;;  %v2136_v13 = vpop.f32.mrb[135].mxu1 }
 0x25d   : > { %v2187_v12 = vmax.f32 %v2037_v21, 0.0  ;;  %2237 = vst [vmem:[%s3620_s5 + $0xa0] sm:$0xff] %v2205_v31  ;;  %v3174_v60 = vadd.f32 %v1816_v42, %v1142_v38  ;;  %v1818_v28 = vpop.f32.mrb[7].mxu0  ;;  %v2137_v3 = vadd.f32 %v4769_v23, %v2136_v13 }
 0x25e   : > { %v2208_v61 = vmax.f32 %v2142_v40, 0.0 }
 0x25f   : > { %2219 = vst [vmem:[%s3620_s5 + $0x10] sm:$0xff] %v2187_v12  ;;  %v2042_v20 = vadd.f32 %v3174_v60, %v4782_v4  ;;  %v2207_v44 = vmax.f32 %v2137_v3, 0.0  ;;  %v2901_v37 = vpop.f32.mrb[136].mxu1 }
 0x260   : > { %2240 = vst [vmem:[%s3620_s5 + $0xb8] sm:$0xff] %v2208_v61  ;;  %v1821_v63 = vpop.f32.mrb[8].mxu0  ;;  %v2152_v52 = vadd.f32 %v4794_v50, %v2901_v37  ;;  %v2146_v36 = vpop.f32.mrb[137].mxu1 }
 0x261   : > { %v2188_v5 = vmax.f32 %v2042_v20, 0.0  ;;  %2239 = vst [vmem:[%s3620_s5 + $0xb0] sm:$0xff] %v2207_v44  ;;  %v3176_v23 = vadd.f32 %v1821_v63, %v1147_v45  ;;  %v1823_v9 = vpop.f32.mrb[9].mxu0  ;;  %v2147_v10 = vadd.f32 %v4785_v19, %v2146_v36 }
 0x262   : > { %v2210_v56 = vmax.f32 %v2152_v52, 0.0 }
 0x263   : > { %2220 = vst [vmem:[%s3620_s5 + $0x18] sm:$0xff] %v2188_v5  ;;  %v2047_v4 = vadd.f32 %v3176_v23, %v4796_v25  ;;  %v2209_v18 = vmax.f32 %v2147_v10, 0.0  ;;  %v2904_v59 = vpop.f32.mrb[138].mxu1 }
 0x264   : > { %2242 = vst [vmem:[%s3620_s5 + $0xc8] sm:$0xff] %v2210_v56  ;;  %v1826_v50 = vpop.f32.mrb[10].mxu0  ;;  %v2162_v46 = vadd.f32 %v4810_v8, %v2904_v59  ;;  %v2156_v2 = vpop.f32.mrb[139].mxu1 }
 0x265   : > { %v2189_v55 = vmax.f32 %v2047_v4, 0.0  ;;  %2241 = vst [vmem:[%s3620_s5 + $0xc0] sm:$0xff] %v2209_v18  ;;  %v3178_v19 = vadd.f32 %v1826_v50, %v1152_v1  ;;  %v1828_v27 = vpop.f32.mrb[11].mxu0  ;;  %v2157_v54 = vadd.f32 %v4803_v15, %v2156_v2 }
 0x266   : > { %v2212_v34 = vmax.f32 %v2162_v46, 0.0 }
 0x267   : > { %2221 = vst [vmem:[%s3620_s5 + $0x20] sm:$0xff] %v2189_v55  ;;  %v2052_v25 = vadd.f32 %v3178_v19, %v4791_v17  ;;  %v2211_v41 = vmax.f32 %v2157_v54, 0.0  ;;  %v2907_v7 = vpop.f32.mrb[140].mxu1  ;;  %v1162_v17 = vadd.f32 %v4668_v0, %v4591_v58 }
 0x268   : > { %2244 = vst [vmem:[%s3620_s5 + $0xd8] sm:$0xff] %v2212_v34  ;;  %v1831_v8 = vpop.f32.mrb[12].mxu0  ;;  %v2172_v33 = vadd.f32 %v4826_v39, %v2907_v7  ;;  %v2166_v24 = vpop.f32.mrb[141].mxu1 }
 0x269   : > { %v2190_v32 = vmax.f32 %v2052_v25, 0.0  ;;  %2243 = vst [vmem:[%s3620_s5 + $0xd0] sm:$0xff] %v2211_v41  ;;  %v3180_v15 = vadd.f32 %v1831_v8, %v1157_v53  ;;  %v1833_v16 = vpop.f32.mrb[13].mxu0  ;;  %v2167_v49 = vadd.f32 %v4817_v14, %v2166_v24 }
 0x26a   : > { %v2214_v35 = vmax.f32 %v2172_v33, 0.0 }
 0x26b   : > { %2222 = vst [vmem:[%s3620_s5 + $0x28] sm:$0xff] %v2190_v32  ;;  %v2057_v57 = vadd.f32 %v3180_v15, %v4805_v47  ;;  %v2213_v26 = vmax.f32 %v2167_v49, 0.0  ;;  %v2910_v39 = vpop.f32.mrb[142].mxu1 }
 0x26c   : > { %2246 = vst [vmem:[%s3620_s5 + $0xe8] sm:$0xff] %v2214_v35  ;;  %v1836_v29 = vpop.f32.mrb[14].mxu0  ;;  %v2182_v62 = vadd.f32 %v4844_v6, %v2910_v39  ;;  %v2176_v11 = vpop.f32.mrb[143].mxu1 }
 0x26d   : > { %v2191_v14 = vmax.f32 %v2057_v57, 0.0  ;;  %2245 = vst [vmem:[%s3620_s5 + $0xe0] sm:$0xff] %v2213_v26  ;;  %v3182_v48 = vadd.f32 %v1836_v29, %v1162_v17  ;;  %v1838_v43 = vpop.f32.mrb[15].mxu0  ;;  %v2177_v58 = vadd.f32 %v4835_v51, %v2176_v11 }
 0x26e   : > { %v2216_v0 = vmax.f32 %v2182_v62, 0.0 }
 0x26f   : > { %2223 = vst [vmem:[%s3620_s5 + $0x30] sm:$0xff] %v2191_v14  ;;  %v2062_v47 = vadd.f32 %v3182_v48, %v4800_v30  ;;  %v2215_v38 = vmax.f32 %v2177_v58, 0.0 }
 0x270   : > { %2248 = vst [vmem:[%s3620_s5 + $0xf8] sm:$0xff] %v2216_v0 }
 0x271   : > { %v2192_v51 = vmax.f32 %v2062_v47, 0.0  ;;  %2247 = vst [vmem:[%s3620_s5 + $0xf0] sm:$0xff] %v2215_v38 }
 0x273   : > { %2224 = vst [vmem:[%s3620_s5 + $0x38] sm:$0xff] %v2192_v51 }
 0x274   : > { %3406 = shalt.err (!%p3403_p3)
}
 0x275   : > { %s3407_s26 = scalar_lea.hbm %s4913_s23, 4096  ;;  %s3411_s6 = scalar_lea.hbm %s4970_s3, 8192 }
 0x276   : > { %p3408_p5 = scmp.ne.s32.totalorder %s4913_s23, %s3407_s26  ;;  %p3412_p9 = scmp.lt.u32.totalorder %s4913_s23, %s4970_s3 }
 0x277   : > { %p3413_p10 = scmp.lt.u32.totalorder %s3411_s6, %s3407_s26  ;;  %p3415_p12 = scmp.lt.u32.totalorder %s3407_s26, %s4913_s23 }
 0x278   : > { %p3409_p6 = pnand %p3408_p5, %p3539_p4 }
 0x279   : > { %p3414_p11 = por %p3413_p10, %p3412_p9 }
 0x27a   : > { %p3410_p7 = pneg %p3409_p6 }
 0x27b   : > { %p3416_p13 = por %p3415_p12, %p3414_p11 }
 0x27d   : > { %p3417_p0 = pnand %p3416_p13, %p3410_p7 }
 0x27f   : > { %3420 = shalt.err (!%p3417_p0)
}
 0x280   : > { %s3477_s9 = smov 128   ;;  %s3478_s10 = smov 8  }
 0x281   : > { %3335 = dma.vmem_to_hbm [thread:$0]  (%p3539_p4), %s4915_s18, 4096, %s4913_s23, %s4921_s15, %s3477_s9, %s3477_s9, %s3478_s10  }
 0x282 PF: > { %p3341_p1 = scmp.ge.s32.totalorder %s3473_s17, 2  ;;  %s2280_s11 = sand.u32 1, %s3453_s12  }
 0x283   : > { %s2281_s19 = scalar_lea.sflag [#allocation5], %s2280_s11 }
 0x284   : > { %p3338_p2 = pnand %p3341_p1, %p3546_p8 }
 0x286   : > { %3448 = dma.done.wait (!%p3338_p2), %s2281_s19, 4096  }
 0x287   : > { %3450 = vsyncadd (!%p3338_p2), %s2281_s19, 4294963200  ;;  %s16_s17 = sadd.s32 1, %s3473_s17   ;;  %s5113_s12 = smov %s3457_s13 }
 0x288   : > { %p13_p3 = scmp.ge.s32.totalorder %s16_s17, 4   ;;  %s5114_s13 = smov %s3461_s14 }
 0x289   : > { %s5115_s14 = smov %s3552_s25  ;;  %s5116_s15 = smov %s3469_s16 }
 0x28a   : > { %s5117_s16 = smov %s5119_s20  ;;  %15 = sbr.rel (!%p13_p3) target bundleno = 4 (0x4), region = 189 }
 0x291   :  { %2286 = vsyncpa [#allocation5], 1 }
 0x292   :  { %2288 = vsyncpa [#allocation5 + $0x1], 1 }
 0x293   :  { %2289 = vsyncmov [#allocation3] }
 0x296   :  { %s2290_s22 = vpop.sfrf %2289 }
 0x297   :  { %p2780_p4 = scmp.ne.s32.totalorder %s2290_s22, 0 }
 0x299   :  { %2294 = shalt.err (%p2780_p4)  }
 0x29a   :  { %2296 = vsyncmov [#allocation3 + $0x1] }
 0x29d   :  { %s2297_s24 = vpop.sfrf %2296 }
 0x29e   :  { %p2781_p8 = scmp.ne.s32.totalorder %s2297_s24, 0 }
 0x2a0   :  { %2301 = shalt.err (%p2781_p8)  }

</bundles_post_ra>
